<compile_context>
chip_gen: v7x
topology: tpu7x:2x2x1
jax: 0.10.0
libtpu: 0.0.40
codegen_flags: <defaults>
</compile_context>

<pallas_src>
import functools

import jax
import jax.numpy as jnp
from jax.experimental import pallas as pl
from jax.experimental.pallas import tpu as pltpu

# Python floats only -- jnp scalars here would become captured kernel constants.
EPS = 1e-5
NEG = -1e30
LEAKY_SLOPE = 0.2

OUT_DIM = 2145 * 2                              # 4290
OUT_PAD = ((OUT_DIM + 127) // 128) * 128        # 4352 -> lane-dense stores


# ----------------------------------------------------------------------------
# In-kernel helper: dense single-head GATConv (row i = target, col j = source)
# ----------------------------------------------------------------------------
def _gat(x, w, a_src_v, a_dst_v, bias, adj):
    if x.shape[1] == 1:
        h = x * w                                                # (N,1)*(1,F) == x @ w
    else:
        h = jnp.dot(x.astype(jnp.bfloat16), w.astype(jnp.bfloat16),
                    preferred_element_type=jnp.float32)          # (N, F) MXU bf16
    a_src = jnp.sum(h * a_src_v, axis=-1, keepdims=True)         # (N, 1)
    a_dst = jnp.sum(h * a_dst_v, axis=-1, keepdims=True)         # (N, 1)
    e = a_dst + a_src.T                                          # (N, N): e[i,j]
    e = jnp.where(e > 0, e, LEAKY_SLOPE * e)                     # leaky_relu
    e = jnp.where(adj > 0, e, NEG)                               # mask non-edges (adj bf16 0/1)
    e = e - jnp.max(e, axis=-1, keepdims=True)                   # softmax over sources
    p = jnp.exp(e)                                               # masked entries underflow to 0
    inv_den = pl.reciprocal(jnp.sum(p, axis=-1, keepdims=True), approx=True)
    alpha = p * inv_den                                          # self loops => den > 0
    return jnp.dot(alpha.astype(jnp.bfloat16), h.astype(jnp.bfloat16),
                   preferred_element_type=jnp.float32) + bias


# ----------------------------------------------------------------------------
# Single fused kernel: GAT+tanh -> BatchNorm -> GraphNorm -> GAT+tanh
#                      -> [gmp || gap] -> Linear
# ----------------------------------------------------------------------------
def gnn_kernel(x_ref, adj_ref, mem_s_ref, mem_t_ref, vecs_ref,
               w0_ref, w1_ref, w_out_hbm, b_out_ref,
               o_ref, w_out_vmem, dma_sem):
    # Kick off the dominant DMA first so it overlaps the whole graph compute.
    w_out_copy = pltpu.make_async_copy(w_out_hbm, w_out_vmem, dma_sem)
    w_out_copy.start()

    adj = adj_ref[...]                           # (N, N) bf16, exact 0/1 (compare only)
    mem_s = mem_s_ref[...]                       # (G, N) membership / count (pre-scaled)
    mem_t = mem_t_ref[...]                       # (N, G) one-hot membership
    vecs = vecs_ref[...]                         # (8, F) packed GAT vectors

    # ---- initial_conv + tanh  (dropout == identity) -------------------------
    h = jnp.tanh(_gat(x_ref[...], w0_ref[...],
                      vecs[0:1, :], vecs[1:2, :], vecs[2:3, :], adj))   # (N, F)

    # ---- BatchNorm1d (batch stats, weight=1, bias=0) -------------------------
    mu = jnp.mean(h, axis=0, keepdims=True)
    var = jnp.mean((h - mu) * (h - mu), axis=0, keepdims=True)
    h = (h - mu) * jax.lax.rsqrt(var + EPS)

    # ---- GraphNorm (weight=1, bias=0, mean_scale=1) ---------------------------
    g_mean = jnp.dot(mem_s, h, preferred_element_type=jnp.float32)          # (G, F)
    centered = h - jnp.dot(mem_t, g_mean, preferred_element_type=jnp.float32)
    g_var = jnp.dot(mem_s, centered * centered,
                    preferred_element_type=jnp.float32)                     # (G, F)
    h = centered * jax.lax.rsqrt(
        jnp.dot(mem_t, g_var, preferred_element_type=jnp.float32) + EPS)

    # ---- conv1 + tanh  (dropout == identity) ---------------------------------
    h = jnp.tanh(_gat(h, w1_ref[...],
                      vecs[3:4, :], vecs[4:5, :], vecs[5:6, :], adj))    # (N, F)

    # ---- [global_max_pool || global_mean_pool] --------------------------------
    mean_pool = jnp.dot(mem_s, h, preferred_element_type=jnp.float32)       # (G, F)
    neg_add = jnp.where(mem_t > 0.0, 0.0, NEG)                              # (N, G)
    g_num = mem_s.shape[0]
    max_rows = [jnp.max(h + neg_add[:, gi:gi + 1], axis=0, keepdims=True)
                for gi in range(g_num)]                                     # static unroll
    max_pool = jnp.concatenate(max_rows, axis=0) if g_num > 1 else max_rows[0]
    pooled = jnp.concatenate([max_pool, mean_pool], axis=1)                 # (G, 2F)

    # ---- final Linear (weight transposed, bf16, lane-padded to OUT_PAD) -------
    w_out_copy.wait()                                                       # overlap done
    out = jnp.dot(pooled.astype(jnp.bfloat16), w_out_vmem[...],
                  preferred_element_type=jnp.float32) + b_out_ref[...]
    o_ref[...] = out


# ----------------------------------------------------------------------------
# Wrapper: dense-graph preprocessing in XLA, one pallas_call, slice the pad off
# ----------------------------------------------------------------------------
def _vmem_spec():
    return pl.BlockSpec(memory_space=pltpu.MemorySpace.VMEM)


@functools.partial(jax.jit, static_argnames=("num_graphs",))
def gnn_forward(x, edge_index, batch, edge_attr, params, num_graphs):
    """Fused GNN forward. edge_attr accepted but unused (GATConv edge_dim=None)."""
    del edge_attr
    x = x.astype(jnp.float32)
    n = x.shape[0]
    g = num_graphs                                    # static -> no host sync
    emb = params["w1"].shape[0]
    emb2, out_pad = params["w_out"].shape             # (2*emb, OUT_PAD)

    # dense adjacency with self loops: adj[dst, src] = 1 ; stored bf16 (exact 0/1)
    adj = jnp.zeros((n, n), jnp.float32)
    adj = adj.at[edge_index[1], edge_index[0]].set(1.0)
    adj = jnp.maximum(adj, jnp.eye(n, dtype=jnp.float32)).astype(jnp.bfloat16)

    # graph membership (pre-scaled by 1/count) and its one-hot transpose
    gids = jnp.arange(g, dtype=batch.dtype)
    mem = (batch[None, :] == gids[:, None]).astype(jnp.float32)    # (G, N)
    mem_t = mem.T                                                   # (N, G)
    mem_scaled = mem / jnp.sum(mem, axis=1, keepdims=True)          # (G, N)

    # explicit VMEM budget (all sizes are static Python ints at trace time)
    vmem_bytes = (
        n * n * (2 + 3 * 4)                 # adj (bf16) + e/p/alpha f32 intermediates
        + 6 * n * emb * 4                   # h / centered / temporaries
        + emb2 * out_pad * 2                # w_out VMEM scratch (bf16)
        + (g + 1) * out_pad * 4             # output + bias
        + (2 * g * n + 8 * emb + emb * emb + n * 128) * 4
        + (4 << 20)                         # headroom
    )
    vmem_limit = int(min(max(vmem_bytes, 16 << 20), 64 << 20))

    out = pl.pallas_call(
        gnn_kernel,
        out_shape=jax.ShapeDtypeStruct((g, out_pad), jnp.float32),
        in_specs=[
            _vmem_spec(),                           # x
            _vmem_spec(),                           # adj (bf16)
            _vmem_spec(),                           # mem_scaled
            _vmem_spec(),                           # mem_t
            _vmem_spec(),                           # packed GAT vectors
            _vmem_spec(),                           # w0
            _vmem_spec(),                           # w1
            pl.BlockSpec(memory_space=pl.ANY),      # w_out stays in HBM (manual DMA)
            _vmem_spec(),                           # b_out
        ],
        out_specs=_vmem_spec(),
        scratch_shapes=[
            pltpu.VMEM((emb2, out_pad), jnp.bfloat16),   # w_out landing buffer
            pltpu.SemaphoreType.DMA(()),                 # its completion semaphore
        ],
        compiler_params=pltpu.CompilerParams(vmem_limit_bytes=vmem_limit),
    )(x, adj, mem_scaled, mem_t, params["vecs"],
      params["w0"], params["w1"], params["w_out"], params["b_out"])
    return out[:, :OUT_DIM]                                        # (G, 4290)


def init_params(key, emb, in_dim=1):
    ks = jax.random.split(key, 8)
    s = 0.1
    w_out = s * jax.random.normal(ks[6], (2 * emb, OUT_DIM), jnp.float32)
    b_out = s * jax.random.normal(ks[7], (1, OUT_DIM), jnp.float32)
    # lane-pad 4290 -> 4352 and store the big weight in bf16 (MXU-native)
    w_out = jnp.pad(w_out, ((0, 0), (0, OUT_PAD - OUT_DIM))).astype(jnp.bfloat16)
    b_out = jnp.pad(b_out, ((0, 0), (0, OUT_PAD - OUT_DIM)))
    # pack the six (emb,) GAT vectors into one (8, emb) array (1 DMA, 1 buffer)
    zeros = jnp.zeros((emb,), jnp.float32)
    vecs = jnp.stack([
        s * jax.random.normal(ks[1], (emb,), jnp.float32),   # asrc0
        s * jax.random.normal(ks[2], (emb,), jnp.float32),   # adst0
        zeros,                                               # b0
        s * jax.random.normal(ks[4], (emb,), jnp.float32),   # asrc1
        s * jax.random.normal(ks[5], (emb,), jnp.float32),   # adst1
        zeros,                                               # b1
        zeros, zeros,                                        # pad to 8 sublanes
    ], axis=0)
    return {
        # GATConv lin weights (stored transposed: in_dim x emb / emb x emb)
        "w0": s * jax.random.normal(ks[0], (in_dim, emb), jnp.float32),
        "w1": s * jax.random.normal(ks[3], (emb, emb), jnp.float32),
        "vecs": vecs,
        # Linear(2*emb -> 4290), weight transposed, bf16, lane-padded
        "w_out": w_out,
        "b_out": b_out,
    }


if __name__ == "__main__":
    key = jax.random.PRNGKey(0)
    emb = 32
    n_nodes = 16                 # 2 graphs x 8 nodes
    num_graphs = 2
    batch = jnp.array([0] * 8 + [1] * 8, jnp.int32)

    kx, ke, kp = jax.random.split(key, 3)
    x = jax.random.normal(kx, (n_nodes, 1), jnp.float32)   # GATConv(1, emb) input

    # bidirectional chain edges within each graph
    src, dst = [], []
    for base in (0, 8):
        for i in range(7):
            src += [base + i, base + i + 1]
            dst += [base + i + 1, base + i]
    edge_index = jnp.array([src, dst], jnp.int32)                        # (2, 28)
    edge_attr = jax.random.normal(ke, (edge_index.shape[1], 3), jnp.float32)  # unused

    params = init_params(kp, emb, in_dim=1)

    out = gnn_forward(x, edge_index, batch, edge_attr, params, num_graphs)
    out = jax.block_until_ready(out)

    assert out.shape == (num_graphs, OUT_DIM), out.shape
    assert bool(jnp.all(jnp.isfinite(out)))
    print("KERNEL_OK")
</pallas_src>

<mosaic_0001>
module attributes {stable_mosaic.version = 11 : i64} {
  func.func @gnn_kernel(%arg0: memref<16x1xf32, #tpu.memory_space<vmem>>, %arg1: memref<16x16xbf16, #tpu.memory_space<vmem>>, %arg2: memref<2x16xf32, #tpu.memory_space<vmem>>, %arg3: memref<16x2xf32, #tpu.memory_space<vmem>>, %arg4: memref<8x32xf32, #tpu.memory_space<vmem>>, %arg5: memref<1x32xf32, #tpu.memory_space<vmem>>, %arg6: memref<32x32xf32, #tpu.memory_space<vmem>>, %arg7: memref<64x4352xbf16, #tpu.memory_space<any>>, %arg8: memref<1x4352xf32, #tpu.memory_space<vmem>>, %arg9: memref<2x4352xf32, #tpu.memory_space<vmem>>, %arg10: memref<64x4352xbf16, #tpu.memory_space<vmem>>, %arg11: memref<!tpu.dma_semaphore, #tpu.memory_space<semaphore_mem>>) attributes {dimension_semantics = [], scalar_prefetch = 0 : i64, scratch_operands = 2 : i64, tpu.core_type = #tpu.core_type<tc>} {
    tpu.enqueue_dma source(%arg7 : memref<64x4352xbf16, #tpu.memory_space<any>>) target(%arg10 : memref<64x4352xbf16, #tpu.memory_space<vmem>>) target_semaphore(%arg11 : memref<!tpu.dma_semaphore, #tpu.memory_space<semaphore_mem>>)
    %c0 = arith.constant 0 : index
    %c0_0 = arith.constant 0 : index
    %0 = vector.load %arg1[%c0, %c0_0] : memref<16x16xbf16, #tpu.memory_space<vmem>>, vector<16x16xbf16>
    %c0_1 = arith.constant 0 : index
    %c0_2 = arith.constant 0 : index
    %1 = vector.load %arg2[%c0_1, %c0_2] : memref<2x16xf32, #tpu.memory_space<vmem>>, vector<2x16xf32>
    %c0_3 = arith.constant 0 : index
    %c0_4 = arith.constant 0 : index
    %2 = vector.load %arg3[%c0_3, %c0_4] : memref<16x2xf32, #tpu.memory_space<vmem>>, vector<16x2xf32>
    %c0_5 = arith.constant 0 : index
    %c0_6 = arith.constant 0 : index
    %3 = vector.load %arg4[%c0_5, %c0_6] : memref<8x32xf32, #tpu.memory_space<vmem>>, vector<8x32xf32>
    %c0_7 = arith.constant 0 : index
    %c0_8 = arith.constant 0 : index
    %4 = vector.load %arg0[%c0_7, %c0_8] : memref<16x1xf32, #tpu.memory_space<vmem>>, vector<16x1xf32>
    %c0_9 = arith.constant 0 : index
    %c0_10 = arith.constant 0 : index
    %5 = vector.load %arg5[%c0_9, %c0_10] : memref<1x32xf32, #tpu.memory_space<vmem>>, vector<1x32xf32>
    %6 = vector.extract_strided_slice %3 {offsets = [0, 0], sizes = [1, 32], strides = [1, 1]} : vector<8x32xf32> to vector<1x32xf32>
    %7 = vector.extract_strided_slice %3 {offsets = [1, 0], sizes = [1, 32], strides = [1, 1]} : vector<8x32xf32> to vector<1x32xf32>
    %8 = vector.extract_strided_slice %3 {offsets = [2, 0], sizes = [1, 32], strides = [1, 1]} : vector<8x32xf32> to vector<1x32xf32>
    %9 = vector.broadcast %4 : vector<16x1xf32> to vector<16x32xf32>
    %10 = vector.broadcast %5 : vector<1x32xf32> to vector<16x32xf32>
    %11 = arith.mulf %9, %10 : vector<16x32xf32>
    %12 = vector.broadcast %6 : vector<1x32xf32> to vector<16x32xf32>
    %13 = arith.mulf %11, %12 : vector<16x32xf32>
    %cst = arith.constant dense<0.000000e+00> : vector<16xf32>
    %14 = vector.multi_reduction <add>, %13, %cst [1] : vector<16x32xf32> to vector<16xf32>
    %15 = vector.shape_cast %14 : vector<16xf32> to vector<16x1xf32>
    %16 = vector.broadcast %7 : vector<1x32xf32> to vector<16x32xf32>
    %17 = arith.mulf %11, %16 : vector<16x32xf32>
    %cst_11 = arith.constant dense<0.000000e+00> : vector<16xf32>
    %18 = vector.multi_reduction <add>, %17, %cst_11 [1] : vector<16x32xf32> to vector<16xf32>
    %19 = vector.shape_cast %18 : vector<16xf32> to vector<16x1xf32>
    %20 = tpu.transpose %15, [1, 0] : vector<16x1xf32> -> vector<1x16xf32>
    %21 = vector.broadcast %19 : vector<16x1xf32> to vector<16x16xf32>
    %22 = vector.broadcast %20 : vector<1x16xf32> to vector<16x16xf32>
    %23 = arith.addf %21, %22 : vector<16x16xf32>
    %cst_12 = arith.constant 0.000000e+00 : f32
    %24 = vector.broadcast %cst_12 : f32 to vector<16x16xf32>
    %25 = arith.cmpf ogt, %23, %24 : vector<16x16xf32>
    %cst_13 = arith.constant 2.000000e-01 : f32
    %26 = vector.broadcast %cst_13 : f32 to vector<16x16xf32>
    %27 = arith.mulf %26, %23 : vector<16x16xf32>
    %28 = arith.select %25, %23, %27 : vector<16x16xi1>, vector<16x16xf32>
    %cst_14 = arith.constant 0.000000e+00 : bf16
    %29 = vector.broadcast %cst_14 : bf16 to vector<16x16xbf16>
    %30 = arith.cmpf ogt, %0, %29 : vector<16x16xbf16>
    %cst_15 = arith.constant -1.000000e+30 : f32
    %31 = vector.broadcast %cst_15 : f32 to vector<16x16xf32>
    %32 = arith.select %30, %28, %31 : vector<16x16xi1>, vector<16x16xf32>
    %cst_16 = arith.constant dense<0xFF800000> : vector<16xf32>
    %33 = vector.multi_reduction <maximumf>, %32, %cst_16 [1] : vector<16x16xf32> to vector<16xf32>
    %34 = vector.shape_cast %33 : vector<16xf32> to vector<16x1xf32>
    %35 = vector.broadcast %34 : vector<16x1xf32> to vector<16x16xf32>
    %36 = arith.subf %32, %35 : vector<16x16xf32>
    %37 = math.exp %36 : vector<16x16xf32>
    %cst_17 = arith.constant dense<0.000000e+00> : vector<16xf32>
    %38 = vector.multi_reduction <add>, %37, %cst_17 [1] : vector<16x16xf32> to vector<16xf32>
    %39 = vector.shape_cast %38 : vector<16xf32> to vector<16x1xf32>
    %40 = tpu.reciprocal %39 {approx = true} : vector<16x1xf32> -> vector<16x1xf32>
    %41 = vector.broadcast %40 : vector<16x1xf32> to vector<16x16xf32>
    %42 = arith.mulf %37, %41 : vector<16x16xf32>
    %43 = arith.truncf %42 : vector<16x16xf32> to vector<16x16xbf16>
    %44 = arith.truncf %11 : vector<16x32xf32> to vector<16x32xbf16>
    %cst_18 = arith.constant dense<0.000000e+00> : vector<16x32xf32>
    %45 = tpu.matmul %43, %44, %cst_18 {dimension_numbers = #tpu.dot_dimension_numbers<[1], [0], [0], [1], [0, 0, 1, 1], [], []>} : vector<16x16xbf16>, vector<16x32xbf16>, vector<16x32xf32> -> vector<16x32xf32>
    %46 = vector.broadcast %8 : vector<1x32xf32> to vector<16x32xf32>
    %47 = arith.addf %45, %46 : vector<16x32xf32>
    %48 = math.tanh %47 : vector<16x32xf32>
    %cst_19 = arith.constant dense<0.000000e+00> : vector<32xf32>
    %49 = vector.multi_reduction <add>, %48, %cst_19 [0] : vector<16x32xf32> to vector<32xf32>
    %50 = vector.shape_cast %49 : vector<32xf32> to vector<1x32xf32>
    %cst_20 = arith.constant 1.600000e+01 : f32
    %51 = vector.broadcast %cst_20 : f32 to vector<1x32xf32>
    %52 = arith.divf %50, %51 : vector<1x32xf32>
    %53 = vector.broadcast %52 : vector<1x32xf32> to vector<16x32xf32>
    %54 = arith.subf %48, %53 : vector<16x32xf32>
    %55 = vector.broadcast %52 : vector<1x32xf32> to vector<16x32xf32>
    %56 = arith.subf %48, %55 : vector<16x32xf32>
    %57 = arith.mulf %54, %56 : vector<16x32xf32>
    %cst_21 = arith.constant dense<0.000000e+00> : vector<32xf32>
    %58 = vector.multi_reduction <add>, %57, %cst_21 [0] : vector<16x32xf32> to vector<32xf32>
    %59 = vector.shape_cast %58 : vector<32xf32> to vector<1x32xf32>
    %cst_22 = arith.constant 1.600000e+01 : f32
    %60 = vector.broadcast %cst_22 : f32 to vector<1x32xf32>
    %61 = arith.divf %59, %60 : vector<1x32xf32>
    %62 = vector.broadcast %52 : vector<1x32xf32> to vector<16x32xf32>
    %63 = arith.subf %48, %62 : vector<16x32xf32>
    %cst_23 = arith.constant 9.99999974E-6 : f32
    %64 = vector.broadcast %cst_23 : f32 to vector<1x32xf32>
    %65 = arith.addf %61, %64 : vector<1x32xf32>
    %66 = math.rsqrt %65 : vector<1x32xf32>
    %67 = vector.broadcast %66 : vector<1x32xf32> to vector<16x32xf32>
    %68 = arith.mulf %63, %67 : vector<16x32xf32>
    %cst_24 = arith.constant dense<0.000000e+00> : vector<2x32xf32>
    %69 = tpu.matmul %1, %68, %cst_24 {dimension_numbers = #tpu.dot_dimension_numbers<[1], [0], [0], [1], [0, 0, 1, 1], [], []>} : vector<2x16xf32>, vector<16x32xf32>, vector<2x32xf32> -> vector<2x32xf32>
    %cst_25 = arith.constant dense<0.000000e+00> : vector<16x32xf32>
    %70 = tpu.matmul %2, %69, %cst_25 {dimension_numbers = #tpu.dot_dimension_numbers<[1], [0], [0], [1], [0, 0, 1, 1], [], []>} : vector<16x2xf32>, vector<2x32xf32>, vector<16x32xf32> -> vector<16x32xf32>
    %71 = arith.subf %68, %70 : vector<16x32xf32>
    %72 = arith.mulf %71, %71 : vector<16x32xf32>
    %cst_26 = arith.constant dense<0.000000e+00> : vector<2x32xf32>
    %73 = tpu.matmul %1, %72, %cst_26 {dimension_numbers = #tpu.dot_dimension_numbers<[1], [0], [0], [1], [0, 0, 1, 1], [], []>} : vector<2x16xf32>, vector<16x32xf32>, vector<2x32xf32> -> vector<2x32xf32>
    %cst_27 = arith.constant dense<0.000000e+00> : vector<16x32xf32>
    %74 = tpu.matmul %2, %73, %cst_27 {dimension_numbers = #tpu.dot_dimension_numbers<[1], [0], [0], [1], [0, 0, 1, 1], [], []>} : vector<16x2xf32>, vector<2x32xf32>, vector<16x32xf32> -> vector<16x32xf32>
    %cst_28 = arith.constant 9.99999974E-6 : f32
    %75 = vector.broadcast %cst_28 : f32 to vector<16x32xf32>
    %76 = arith.addf %74, %75 : vector<16x32xf32>
    %77 = math.rsqrt %76 : vector<16x32xf32>
    %78 = arith.mulf %71, %77 : vector<16x32xf32>
    %c0_29 = arith.constant 0 : index
    %c0_30 = arith.constant 0 : index
    %79 = vector.load %arg6[%c0_29, %c0_30] : memref<32x32xf32, #tpu.memory_space<vmem>>, vector<32x32xf32>
    %80 = vector.extract_strided_slice %3 {offsets = [3, 0], sizes = [1, 32], strides = [1, 1]} : vector<8x32xf32> to vector<1x32xf32>
    %81 = vector.extract_strided_slice %3 {offsets = [4, 0], sizes = [1, 32], strides = [1, 1]} : vector<8x32xf32> to vector<1x32xf32>
    %82 = vector.extract_strided_slice %3 {offsets = [5, 0], sizes = [1, 32], strides = [1, 1]} : vector<8x32xf32> to vector<1x32xf32>
    %83 = arith.truncf %78 : vector<16x32xf32> to vector<16x32xbf16>
    %84 = arith.truncf %79 : vector<32x32xf32> to vector<32x32xbf16>
    %cst_31 = arith.constant dense<0.000000e+00> : vector<16x32xf32>
    %85 = tpu.matmul %83, %84, %cst_31 {dimension_numbers = #tpu.dot_dimension_numbers<[1], [0], [0], [1], [0, 0, 1, 1], [], []>} : vector<16x32xbf16>, vector<32x32xbf16>, vector<16x32xf32> -> vector<16x32xf32>
    %86 = vector.broadcast %80 : vector<1x32xf32> to vector<16x32xf32>
    %87 = arith.mulf %85, %86 : vector<16x32xf32>
    %cst_32 = arith.constant dense<0.000000e+00> : vector<16xf32>
    %88 = vector.multi_reduction <add>, %87, %cst_32 [1] : vector<16x32xf32> to vector<16xf32>
    %89 = vector.shape_cast %88 : vector<16xf32> to vector<16x1xf32>
    %90 = vector.broadcast %81 : vector<1x32xf32> to vector<16x32xf32>
    %91 = arith.mulf %85, %90 : vector<16x32xf32>
    %cst_33 = arith.constant dense<0.000000e+00> : vector<16xf32>
    %92 = vector.multi_reduction <add>, %91, %cst_33 [1] : vector<16x32xf32> to vector<16xf32>
    %93 = vector.shape_cast %92 : vector<16xf32> to vector<16x1xf32>
    %94 = tpu.transpose %89, [1, 0] : vector<16x1xf32> -> vector<1x16xf32>
    %95 = vector.broadcast %93 : vector<16x1xf32> to vector<16x16xf32>
    %96 = vector.broadcast %94 : vector<1x16xf32> to vector<16x16xf32>
    %97 = arith.addf %95, %96 : vector<16x16xf32>
    %cst_34 = arith.constant 0.000000e+00 : f32
    %98 = vector.broadcast %cst_34 : f32 to vector<16x16xf32>
    %99 = arith.cmpf ogt, %97, %98 : vector<16x16xf32>
    %cst_35 = arith.constant 2.000000e-01 : f32
    %100 = vector.broadcast %cst_35 : f32 to vector<16x16xf32>
    %101 = arith.mulf %100, %97 : vector<16x16xf32>
    %102 = arith.select %99, %97, %101 : vector<16x16xi1>, vector<16x16xf32>
    %cst_36 = arith.constant 0.000000e+00 : bf16
    %103 = vector.broadcast %cst_36 : bf16 to vector<16x16xbf16>
    %104 = arith.cmpf ogt, %0, %103 : vector<16x16xbf16>
    %cst_37 = arith.constant -1.000000e+30 : f32
    %105 = vector.broadcast %cst_37 : f32 to vector<16x16xf32>
    %106 = arith.select %104, %102, %105 : vector<16x16xi1>, vector<16x16xf32>
    %cst_38 = arith.constant dense<0xFF800000> : vector<16xf32>
    %107 = vector.multi_reduction <maximumf>, %106, %cst_38 [1] : vector<16x16xf32> to vector<16xf32>
    %108 = vector.shape_cast %107 : vector<16xf32> to vector<16x1xf32>
    %109 = vector.broadcast %108 : vector<16x1xf32> to vector<16x16xf32>
    %110 = arith.subf %106, %109 : vector<16x16xf32>
    %111 = math.exp %110 : vector<16x16xf32>
    %cst_39 = arith.constant dense<0.000000e+00> : vector<16xf32>
    %112 = vector.multi_reduction <add>, %111, %cst_39 [1] : vector<16x16xf32> to vector<16xf32>
    %113 = vector.shape_cast %112 : vector<16xf32> to vector<16x1xf32>
    %114 = tpu.reciprocal %113 {approx = true} : vector<16x1xf32> -> vector<16x1xf32>
    %115 = vector.broadcast %114 : vector<16x1xf32> to vector<16x16xf32>
    %116 = arith.mulf %111, %115 : vector<16x16xf32>
    %117 = arith.truncf %116 : vector<16x16xf32> to vector<16x16xbf16>
    %118 = arith.truncf %85 : vector<16x32xf32> to vector<16x32xbf16>
    %cst_40 = arith.constant dense<0.000000e+00> : vector<16x32xf32>
    %119 = tpu.matmul %117, %118, %cst_40 {dimension_numbers = #tpu.dot_dimension_numbers<[1], [0], [0], [1], [0, 0, 1, 1], [], []>} : vector<16x16xbf16>, vector<16x32xbf16>, vector<16x32xf32> -> vector<16x32xf32>
    %120 = vector.broadcast %82 : vector<1x32xf32> to vector<16x32xf32>
    %121 = arith.addf %119, %120 : vector<16x32xf32>
    %122 = math.tanh %121 : vector<16x32xf32>
    %cst_41 = arith.constant dense<0.000000e+00> : vector<2x32xf32>
    %123 = tpu.matmul %1, %122, %cst_41 {dimension_numbers = #tpu.dot_dimension_numbers<[1], [0], [0], [1], [0, 0, 1, 1], [], []>} : vector<2x16xf32>, vector<16x32xf32>, vector<2x32xf32> -> vector<2x32xf32>
    %cst_42 = arith.constant 0.000000e+00 : f32
    %124 = vector.broadcast %cst_42 : f32 to vector<16x2xf32>
    %125 = arith.cmpf ogt, %2, %124 : vector<16x2xf32>
    %cst_43 = arith.constant 0.000000e+00 : f32
    %cst_44 = arith.constant -1.000000e+30 : f32
    %126 = vector.broadcast %cst_43 : f32 to vector<16x2xf32>
    %127 = vector.broadcast %cst_44 : f32 to vector<16x2xf32>
    %128 = arith.select %125, %126, %127 : vector<16x2xi1>, vector<16x2xf32>
    %129 = vector.extract_strided_slice %128 {offsets = [0, 0], sizes = [16, 1], strides = [1, 1]} : vector<16x2xf32> to vector<16x1xf32>
    %130 = vector.broadcast %129 : vector<16x1xf32> to vector<16x32xf32>
    %131 = arith.addf %122, %130 : vector<16x32xf32>
    %cst_45 = arith.constant dense<0xFF800000> : vector<32xf32>
    %132 = vector.multi_reduction <maximumf>, %131, %cst_45 [0] : vector<16x32xf32> to vector<32xf32>
    %133 = vector.shape_cast %132 : vector<32xf32> to vector<1x32xf32>
    %134 = vector.extract_strided_slice %128 {offsets = [0, 1], sizes = [16, 1], strides = [1, 1]} : vector<16x2xf32> to vector<16x1xf32>
    %135 = vector.broadcast %134 : vector<16x1xf32> to vector<16x32xf32>
    %136 = arith.addf %122, %135 : vector<16x32xf32>
    %cst_46 = arith.constant dense<0xFF800000> : vector<32xf32>
    %137 = vector.multi_reduction <maximumf>, %136, %cst_46 [0] : vector<16x32xf32> to vector<32xf32>
    %138 = vector.shape_cast %137 : vector<32xf32> to vector<1x32xf32>
    %139 = tpu.concatenate %133, %138 in 0 : vector<1x32xf32>, vector<1x32xf32> -> vector<2x32xf32>
    %140 = tpu.concatenate %139, %123 in 1 : vector<2x32xf32>, vector<2x32xf32> -> vector<2x64xf32>
    tpu.wait_dma2 semaphore(%arg11 : memref<!tpu.dma_semaphore, #tpu.memory_space<semaphore_mem>>) src(%arg7 : memref<64x4352xbf16, #tpu.memory_space<any>>) dst(%arg10 : memref<64x4352xbf16, #tpu.memory_space<vmem>>)
    %141 = arith.truncf %140 : vector<2x64xf32> to vector<2x64xbf16>
    %c0_47 = arith.constant 0 : index
    %c0_48 = arith.constant 0 : index
    %142 = vector.load %arg10[%c0_47, %c0_48] : memref<64x4352xbf16, #tpu.memory_space<vmem>>, vector<64x4352xbf16>
    %cst_49 = arith.constant dense<0.000000e+00> : vector<2x4352xf32>
    %143 = tpu.matmul %141, %142, %cst_49 {dimension_numbers = #tpu.dot_dimension_numbers<[1], [0], [0], [1], [0, 0, 1, 1], [], []>} : vector<2x64xbf16>, vector<64x4352xbf16>, vector<2x4352xf32> -> vector<2x4352xf32>
    %c0_50 = arith.constant 0 : index
    %c0_51 = arith.constant 0 : index
    %144 = vector.load %arg8[%c0_50, %c0_51] : memref<1x4352xf32, #tpu.memory_space<vmem>>, vector<1x4352xf32>
    %145 = vector.broadcast %144 : vector<1x4352xf32> to vector<2x4352xf32>
    %146 = arith.addf %143, %145 : vector<2x4352xf32>
    %c0_52 = arith.constant 0 : index
    %c0_53 = arith.constant 0 : index
    %147 = vector.load %arg9[%c0_52, %c0_53] : memref<2x4352xf32, #tpu.memory_space<vmem>>, vector<2x4352xf32>
    tpu.vector_store %arg9[%c0_52, %c0_53], %146 {strides = array<i32>} : memref<2x4352xf32, #tpu.memory_space<vmem>>, vector<2x4352xf32>,
    return
  }
}

</mosaic_0001>

<bundles_post_ra>
// kernel: gnn_forward.1
= control target key start
LH: loop header
LB: loop body
LE: loop exit
PB: predicated region body
PF: predicated region fallthrough
CT: control target
= control target key end

     0   :  { %14 = vsyncpa [#allocation5], 0  ;;  %s4617_s0 = inlined_call_operand.vmem [shape: f32[16,1], index: 0, kind: input, shape index: {}]   ;;  %s4618_s1 = inlined_call_operand.vmem [shape: bf16[16,16], index: 1, kind: input, shape index: {}]   ;;  %s4619_s2 = inlined_call_operand.vmem [shape: f32[2,16], index: 2, kind: input, shape index: {}]   ;;  %s4620_s3 = inlined_call_operand.vmem [shape: f32[16,2], index: 3, kind: input, shape index: {}]   ;;  %s4621_s4 = inlined_call_operand.vmem [shape: f32[8,32], index: 4, kind: input, shape index: {}]   ;;  %s4622_s5 = inlined_call_operand.vmem [shape: f32[1,32], index: 5, kind: input, shape index: {}]   ;;  %s4623_s6 = inlined_call_operand.vmem [shape: f32[32,32], index: 6, kind: input, shape index: {}]   ;;  %s4624_s7 = inlined_call_operand.vmem [shape: bf16[64,4352], index: 7, kind: input, shape index: {}]   ;;  %s4625_s8 = inlined_call_operand.vmem [shape: f32[1,4352], index: 8, kind: input, shape index: {}]   ;;  %s4626_s9 = inlined_call_operand.hbm [shape: f32[2,4352], index: 9, kind: output, shape index: {}]  }
   0x1   :  { %v51_v0 = vld [vmem:[%s4624_s7] sm:$0xf]  ;;  %v53_v1 = vld [vmem:[%s4624_s7 + $0x88] sm:$0xf]  ;;  %v55_v2 = vld [vmem:[%s4624_s7 + $0x4] sm:$0xf] }
   0x2   :  { %52 = vst [vmem:[#allocation2] sm:$0xf] %v51_v0  ;;  %54 = vst [vmem:[#allocation2 + $0x4] sm:$0xf] %v53_v1  ;;  %v57_v3 = vld [vmem:[%s4624_s7 + $0x8c] sm:$0xf] }
   0x3   :  { %v59_v4 = vld [vmem:[%s4624_s7 + $0x8] sm:$0xf]  ;;  %56 = vst [vmem:[#allocation2 + $0x8] sm:$0xf] %v55_v2  ;;  %58 = vst [vmem:[#allocation2 + $0xc] sm:$0xf] %v57_v3 }
   0x4   :  { %60 = vst [vmem:[#allocation2 + $0x10] sm:$0xf] %v59_v4  ;;  %v61_v5 = vld [vmem:[%s4624_s7 + $0x90] sm:$0xf]  ;;  %v63_v6 = vld [vmem:[%s4624_s7 + $0xc] sm:$0xf] }
   0x5   :  { %v65_v7 = vld [vmem:[%s4624_s7 + $0x94] sm:$0xf]  ;;  %62 = vst [vmem:[#allocation2 + $0x14] sm:$0xf] %v61_v5  ;;  %64 = vst [vmem:[#allocation2 + $0x18] sm:$0xf] %v63_v6 }
   0x6   :  { %66 = vst [vmem:[#allocation2 + $0x1c] sm:$0xf] %v65_v7  ;;  %v67_v8 = vld [vmem:[%s4624_s7 + $0x10] sm:$0xf]  ;;  %v69_v9 = vld [vmem:[%s4624_s7 + $0x98] sm:$0xf] }
   0x7   :  { %v71_v10 = vld [vmem:[%s4624_s7 + $0x14] sm:$0xf]  ;;  %68 = vst [vmem:[#allocation2 + $0x20] sm:$0xf] %v67_v8  ;;  %70 = vst [vmem:[#allocation2 + $0x24] sm:$0xf] %v69_v9 }
   0x8   :  { %72 = vst [vmem:[#allocation2 + $0x28] sm:$0xf] %v71_v10  ;;  %v73_v11 = vld [vmem:[%s4624_s7 + $0x9c] sm:$0xf]  ;;  %v75_v12 = vld [vmem:[%s4624_s7 + $0x18] sm:$0xf] }
   0x9   :  { %v77_v13 = vld [vmem:[%s4624_s7 + $0xa0] sm:$0xf]  ;;  %74 = vst [vmem:[#allocation2 + $0x2c] sm:$0xf] %v73_v11  ;;  %76 = vst [vmem:[#allocation2 + $0x30] sm:$0xf] %v75_v12 }
   0xa   :  { %78 = vst [vmem:[#allocation2 + $0x34] sm:$0xf] %v77_v13  ;;  %v79_v14 = vld [vmem:[%s4624_s7 + $0x1c] sm:$0xf]  ;;  %v81_v15 = vld [vmem:[%s4624_s7 + $0xa4] sm:$0xf] }
   0xb   :  { %v83_v16 = vld [vmem:[%s4624_s7 + $0x20] sm:$0xf]  ;;  %80 = vst [vmem:[#allocation2 + $0x38] sm:$0xf] %v79_v14  ;;  %82 = vst [vmem:[#allocation2 + $0x3c] sm:$0xf] %v81_v15 }
   0xc   :  { %84 = vst [vmem:[#allocation2 + $0x40] sm:$0xf] %v83_v16  ;;  %v85_v17 = vld [vmem:[%s4624_s7 + $0xa8] sm:$0xf]  ;;  %v87_v18 = vld [vmem:[%s4624_s7 + $0x24] sm:$0xf] }
   0xd   :  { %v89_v19 = vld [vmem:[%s4624_s7 + $0xac] sm:$0xf]  ;;  %86 = vst [vmem:[#allocation2 + $0x44] sm:$0xf] %v85_v17  ;;  %88 = vst [vmem:[#allocation2 + $0x48] sm:$0xf] %v87_v18 }
   0xe   :  { %90 = vst [vmem:[#allocation2 + $0x4c] sm:$0xf] %v89_v19  ;;  %v91_v20 = vld [vmem:[%s4624_s7 + $0x28] sm:$0xf]  ;;  %v93_v21 = vld [vmem:[%s4624_s7 + $0xb0] sm:$0xf] }
   0xf   :  { %v95_v22 = vld [vmem:[%s4624_s7 + $0x2c] sm:$0xf]  ;;  %92 = vst [vmem:[#allocation2 + $0x50] sm:$0xf] %v91_v20  ;;  %94 = vst [vmem:[#allocation2 + $0x54] sm:$0xf] %v93_v21 }
  0x10   :  { %96 = vst [vmem:[#allocation2 + $0x58] sm:$0xf] %v95_v22  ;;  %v97_v23 = vld [vmem:[%s4624_s7 + $0xb4] sm:$0xf]  ;;  %v99_v24 = vld [vmem:[%s4624_s7 + $0x30] sm:$0xf] }
  0x11   :  { %v101_v25 = vld [vmem:[%s4624_s7 + $0xb8] sm:$0xf]  ;;  %98 = vst [vmem:[#allocation2 + $0x5c] sm:$0xf] %v97_v23  ;;  %100 = vst [vmem:[#allocation2 + $0x60] sm:$0xf] %v99_v24 }
  0x12   :  { %102 = vst [vmem:[#allocation2 + $0x64] sm:$0xf] %v101_v25  ;;  %v103_v26 = vld [vmem:[%s4624_s7 + $0x34] sm:$0xf]  ;;  %v105_v27 = vld [vmem:[%s4624_s7 + $0xbc] sm:$0xf] }
  0x13   :  { %v107_v28 = vld [vmem:[%s4624_s7 + $0x38] sm:$0xf]  ;;  %104 = vst [vmem:[#allocation2 + $0x68] sm:$0xf] %v103_v26  ;;  %106 = vst [vmem:[#allocation2 + $0x6c] sm:$0xf] %v105_v27 }
  0x14   :  { %108 = vst [vmem:[#allocation2 + $0x70] sm:$0xf] %v107_v28  ;;  %v109_v29 = vld [vmem:[%s4624_s7 + $0xc0] sm:$0xf]  ;;  %v111_v30 = vld [vmem:[%s4624_s7 + $0x3c] sm:$0xf] }
  0x15   :  { %v113_v31 = vld [vmem:[%s4624_s7 + $0xc4] sm:$0xf]  ;;  %110 = vst [vmem:[#allocation2 + $0x74] sm:$0xf] %v109_v29  ;;  %112 = vst [vmem:[#allocation2 + $0x78] sm:$0xf] %v111_v30 }
  0x16   :  { %114 = vst [vmem:[#allocation2 + $0x7c] sm:$0xf] %v113_v31  ;;  %v115_v32 = vld [vmem:[%s4624_s7 + $0x40] sm:$0xf]  ;;  %v117_v33 = vld [vmem:[%s4624_s7 + $0xc8] sm:$0xf] }
  0x17   :  { %v119_v34 = vld [vmem:[%s4624_s7 + $0x44] sm:$0xf]  ;;  %116 = vst [vmem:[#allocation2 + $0x80] sm:$0xf] %v115_v32  ;;  %118 = vst [vmem:[#allocation2 + $0x84] sm:$0xf] %v117_v33 }
  0x18   :  { %120 = vst [vmem:[#allocation2 + $0x88] sm:$0xf] %v119_v34  ;;  %v121_v35 = vld [vmem:[%s4624_s7 + $0xcc] sm:$0xf]  ;;  %v123_v36 = vld [vmem:[%s4624_s7 + $0x48] sm:$0xf] }
  0x19   :  { %v125_v37 = vld [vmem:[%s4624_s7 + $0xd0] sm:$0xf]  ;;  %122 = vst [vmem:[#allocation2 + $0x8c] sm:$0xf] %v121_v35  ;;  %124 = vst [vmem:[#allocation2 + $0x90] sm:$0xf] %v123_v36 }
  0x1a   :  { %126 = vst [vmem:[#allocation2 + $0x94] sm:$0xf] %v125_v37  ;;  %v127_v38 = vld [vmem:[%s4624_s7 + $0x4c] sm:$0xf]  ;;  %v129_v39 = vld [vmem:[%s4624_s7 + $0xd4] sm:$0xf] }
  0x1b   :  { %v131_v40 = vld [vmem:[%s4624_s7 + $0x50] sm:$0xf]  ;;  %128 = vst [vmem:[#allocation2 + $0x98] sm:$0xf] %v127_v38  ;;  %130 = vst [vmem:[#allocation2 + $0x9c] sm:$0xf] %v129_v39 }
  0x1c   :  { %132 = vst [vmem:[#allocation2 + $0xa0] sm:$0xf] %v131_v40  ;;  %v133_v41 = vld [vmem:[%s4624_s7 + $0xd8] sm:$0xf]  ;;  %v135_v42 = vld [vmem:[%s4624_s7 + $0x54] sm:$0xf] }
  0x1d   :  { %v137_v43 = vld [vmem:[%s4624_s7 + $0xdc] sm:$0xf]  ;;  %134 = vst [vmem:[#allocation2 + $0xa4] sm:$0xf] %v133_v41  ;;  %136 = vst [vmem:[#allocation2 + $0xa8] sm:$0xf] %v135_v42 }
  0x1e   :  { %138 = vst [vmem:[#allocation2 + $0xac] sm:$0xf] %v137_v43  ;;  %v139_v44 = vld [vmem:[%s4624_s7 + $0x58] sm:$0xf]  ;;  %v141_v45 = vld [vmem:[%s4624_s7 + $0xe0] sm:$0xf] }
  0x1f   :  { %v143_v46 = vld [vmem:[%s4624_s7 + $0x5c] sm:$0xf]  ;;  %140 = vst [vmem:[#allocation2 + $0xb0] sm:$0xf] %v139_v44  ;;  %142 = vst [vmem:[#allocation2 + $0xb4] sm:$0xf] %v141_v45 }
  0x20   :  { %144 = vst [vmem:[#allocation2 + $0xb8] sm:$0xf] %v143_v46  ;;  %v145_v47 = vld [vmem:[%s4624_s7 + $0xe4] sm:$0xf]  ;;  %v147_v48 = vld [vmem:[%s4624_s7 + $0x60] sm:$0xf] }
  0x21   :  { %v149_v49 = vld [vmem:[%s4624_s7 + $0xe8] sm:$0xf]  ;;  %146 = vst [vmem:[#allocation2 + $0xbc] sm:$0xf] %v145_v47  ;;  %148 = vst [vmem:[#allocation2 + $0xc0] sm:$0xf] %v147_v48 }
  0x22   :  { %150 = vst [vmem:[#allocation2 + $0xc4] sm:$0xf] %v149_v49  ;;  %v151_v50 = vld [vmem:[%s4624_s7 + $0x64] sm:$0xf]  ;;  %v153_v51 = vld [vmem:[%s4624_s7 + $0xec] sm:$0xf] }
  0x23   :  { %v155_v52 = vld [vmem:[%s4624_s7 + $0x68] sm:$0xf]  ;;  %152 = vst [vmem:[#allocation2 + $0xc8] sm:$0xf] %v151_v50  ;;  %154 = vst [vmem:[#allocation2 + $0xcc] sm:$0xf] %v153_v51 }
  0x24   :  { %156 = vst [vmem:[#allocation2 + $0xd0] sm:$0xf] %v155_v52  ;;  %v157_v53 = vld [vmem:[%s4624_s7 + $0xf0] sm:$0xf]  ;;  %v159_v54 = vld [vmem:[%s4624_s7 + $0x6c] sm:$0xf] }
  0x25   :  { %v161_v55 = vld [vmem:[%s4624_s7 + $0xf4] sm:$0xf]  ;;  %158 = vst [vmem:[#allocation2 + $0xd4] sm:$0xf] %v157_v53  ;;  %160 = vst [vmem:[#allocation2 + $0xd8] sm:$0xf] %v159_v54 }
  0x26   :  { %162 = vst [vmem:[#allocation2 + $0xdc] sm:$0xf] %v161_v55  ;;  %v163_v56 = vld [vmem:[%s4624_s7 + $0x70] sm:$0xf]  ;;  %v165_v57 = vld [vmem:[%s4624_s7 + $0xf8] sm:$0xf] }
  0x27   :  { %v167_v58 = vld [vmem:[%s4624_s7 + $0x74] sm:$0xf]  ;;  %164 = vst [vmem:[#allocation2 + $0xe0] sm:$0xf] %v163_v56  ;;  %166 = vst [vmem:[#allocation2 + $0xe4] sm:$0xf] %v165_v57 }
  0x28   :  { %168 = vst [vmem:[#allocation2 + $0xe8] sm:$0xf] %v167_v58  ;;  %v169_v59 = vld [vmem:[%s4624_s7 + $0xfc] sm:$0xf]  ;;  %v171_v60 = vld [vmem:[%s4624_s7 + $0x78] sm:$0xf] }
  0x29   :  { %v173_v61 = vld [vmem:[%s4624_s7 + $0x100] sm:$0xf]  ;;  %170 = vst [vmem:[#allocation2 + $0xec] sm:$0xf] %v169_v59  ;;  %172 = vst [vmem:[#allocation2 + $0xf0] sm:$0xf] %v171_v60 }
  0x2a   :  { %174 = vst [vmem:[#allocation2 + $0xf4] sm:$0xf] %v173_v61  ;;  %v175_v62 = vld [vmem:[%s4624_s7 + $0x7c] sm:$0xf]  ;;  %v177_v63 = vld [vmem:[%s4624_s7 + $0x104] sm:$0xf] }
  0x2b   :  { %v179_v0 = vld [vmem:[%s4624_s7 + $0x80] sm:$0xf]  ;;  %176 = vst [vmem:[#allocation2 + $0xf8] sm:$0xf] %v175_v62  ;;  %178 = vst [vmem:[#allocation2 + $0xfc] sm:$0xf] %v177_v63 }
  0x2c   :  { %180 = vst [vmem:[#allocation2 + $0x100] sm:$0xf] %v179_v0  ;;  %v181_v1 = vld [vmem:[%s4624_s7 + $0x108] sm:$0xf]  ;;  %v183_v2 = vld [vmem:[%s4624_s7 + $0x84] sm:$0xf] }
  0x2d   :  { %v185_v3 = vld [vmem:[%s4624_s7 + $0x10c] sm:$0xff]   ;;  %182 = vst [vmem:[#allocation2 + $0x104] sm:$0xf] %v181_v1  ;;  %184 = vst [vmem:[#allocation2 + $0x108] sm:$0xf] %v183_v2 }
  0x2e   :  { %186 = vst [vmem:[#allocation2 + $0x10c] sm:$0xff] %v185_v3   ;;  %v189_v4 = vld [vmem:[%s4624_s7 + $0x198] sm:$0xf]  ;;  %v191_v5 = vld [vmem:[%s4624_s7 + $0x114] sm:$0xf] }
  0x2f   :  { %v193_v6 = vld [vmem:[%s4624_s7 + $0x19c] sm:$0xf]  ;;  %190 = vst [vmem:[#allocation2 + $0x114] sm:$0xf] %v189_v4  ;;  %192 = vst [vmem:[#allocation2 + $0x118] sm:$0xf] %v191_v5 }
  0x30   :  { %194 = vst [vmem:[#allocation2 + $0x11c] sm:$0xf] %v193_v6  ;;  %v195_v7 = vld [vmem:[%s4624_s7 + $0x118] sm:$0xf]  ;;  %v197_v8 = vld [vmem:[%s4624_s7 + $0x1a0] sm:$0xf] }
  0x31   :  { %v199_v9 = vld [vmem:[%s4624_s7 + $0x11c] sm:$0xf]  ;;  %196 = vst [vmem:[#allocation2 + $0x120] sm:$0xf] %v195_v7  ;;  %198 = vst [vmem:[#allocation2 + $0x124] sm:$0xf] %v197_v8 }
  0x32   :  { %200 = vst [vmem:[#allocation2 + $0x128] sm:$0xf] %v199_v9  ;;  %v201_v10 = vld [vmem:[%s4624_s7 + $0x1a4] sm:$0xf]  ;;  %v203_v11 = vld [vmem:[%s4624_s7 + $0x120] sm:$0xf] }
  0x33   :  { %v205_v12 = vld [vmem:[%s4624_s7 + $0x1a8] sm:$0xf]  ;;  %202 = vst [vmem:[#allocation2 + $0x12c] sm:$0xf] %v201_v10  ;;  %204 = vst [vmem:[#allocation2 + $0x130] sm:$0xf] %v203_v11 }
  0x34   :  { %206 = vst [vmem:[#allocation2 + $0x134] sm:$0xf] %v205_v12  ;;  %v207_v13 = vld [vmem:[%s4624_s7 + $0x124] sm:$0xf]  ;;  %v209_v14 = vld [vmem:[%s4624_s7 + $0x1ac] sm:$0xf] }
  0x35   :  { %v211_v15 = vld [vmem:[%s4624_s7 + $0x128] sm:$0xf]  ;;  %208 = vst [vmem:[#allocation2 + $0x138] sm:$0xf] %v207_v13  ;;  %210 = vst [vmem:[#allocation2 + $0x13c] sm:$0xf] %v209_v14 }
  0x36   :  { %212 = vst [vmem:[#allocation2 + $0x140] sm:$0xf] %v211_v15  ;;  %v213_v16 = vld [vmem:[%s4624_s7 + $0x1b0] sm:$0xf]  ;;  %v215_v17 = vld [vmem:[%s4624_s7 + $0x12c] sm:$0xf] }
  0x37   :  { %v217_v18 = vld [vmem:[%s4624_s7 + $0x1b4] sm:$0xf]  ;;  %214 = vst [vmem:[#allocation2 + $0x144] sm:$0xf] %v213_v16  ;;  %216 = vst [vmem:[#allocation2 + $0x148] sm:$0xf] %v215_v17 }
  0x38   :  { %218 = vst [vmem:[#allocation2 + $0x14c] sm:$0xf] %v217_v18  ;;  %v219_v19 = vld [vmem:[%s4624_s7 + $0x130] sm:$0xf]  ;;  %v221_v20 = vld [vmem:[%s4624_s7 + $0x1b8] sm:$0xf] }
  0x39   :  { %v223_v21 = vld [vmem:[%s4624_s7 + $0x134] sm:$0xf]  ;;  %220 = vst [vmem:[#allocation2 + $0x150] sm:$0xf] %v219_v19  ;;  %222 = vst [vmem:[#allocation2 + $0x154] sm:$0xf] %v221_v20 }
  0x3a   :  { %224 = vst [vmem:[#allocation2 + $0x158] sm:$0xf] %v223_v21  ;;  %v225_v22 = vld [vmem:[%s4624_s7 + $0x1bc] sm:$0xf]  ;;  %v227_v23 = vld [vmem:[%s4624_s7 + $0x138] sm:$0xf] }
  0x3b   :  { %v229_v24 = vld [vmem:[%s4624_s7 + $0x1c0] sm:$0xf]  ;;  %226 = vst [vmem:[#allocation2 + $0x15c] sm:$0xf] %v225_v22  ;;  %228 = vst [vmem:[#allocation2 + $0x160] sm:$0xf] %v227_v23 }
  0x3c   :  { %230 = vst [vmem:[#allocation2 + $0x164] sm:$0xf] %v229_v24  ;;  %v231_v25 = vld [vmem:[%s4624_s7 + $0x13c] sm:$0xf]  ;;  %v233_v26 = vld [vmem:[%s4624_s7 + $0x1c4] sm:$0xf] }
  0x3d   :  { %v235_v27 = vld [vmem:[%s4624_s7 + $0x140] sm:$0xf]  ;;  %232 = vst [vmem:[#allocation2 + $0x168] sm:$0xf] %v231_v25  ;;  %234 = vst [vmem:[#allocation2 + $0x16c] sm:$0xf] %v233_v26 }
  0x3e   :  { %236 = vst [vmem:[#allocation2 + $0x170] sm:$0xf] %v235_v27  ;;  %v237_v28 = vld [vmem:[%s4624_s7 + $0x1c8] sm:$0xf]  ;;  %v239_v29 = vld [vmem:[%s4624_s7 + $0x144] sm:$0xf] }
  0x3f   :  { %v241_v30 = vld [vmem:[%s4624_s7 + $0x1cc] sm:$0xf]  ;;  %238 = vst [vmem:[#allocation2 + $0x174] sm:$0xf] %v237_v28  ;;  %240 = vst [vmem:[#allocation2 + $0x178] sm:$0xf] %v239_v29 }
  0x40   :  { %242 = vst [vmem:[#allocation2 + $0x17c] sm:$0xf] %v241_v30  ;;  %v243_v31 = vld [vmem:[%s4624_s7 + $0x148] sm:$0xf]  ;;  %v245_v32 = vld [vmem:[%s4624_s7 + $0x1d0] sm:$0xf] }
  0x41   :  { %v247_v33 = vld [vmem:[%s4624_s7 + $0x14c] sm:$0xf]  ;;  %244 = vst [vmem:[#allocation2 + $0x180] sm:$0xf] %v243_v31  ;;  %246 = vst [vmem:[#allocation2 + $0x184] sm:$0xf] %v245_v32 }
  0x42   :  { %248 = vst [vmem:[#allocation2 + $0x188] sm:$0xf] %v247_v33  ;;  %v249_v34 = vld [vmem:[%s4624_s7 + $0x1d4] sm:$0xf]  ;;  %v251_v35 = vld [vmem:[%s4624_s7 + $0x150] sm:$0xf] }
  0x43   :  { %v253_v36 = vld [vmem:[%s4624_s7 + $0x1d8] sm:$0xf]  ;;  %250 = vst [vmem:[#allocation2 + $0x18c] sm:$0xf] %v249_v34  ;;  %252 = vst [vmem:[#allocation2 + $0x190] sm:$0xf] %v251_v35 }
  0x44   :  { %254 = vst [vmem:[#allocation2 + $0x194] sm:$0xf] %v253_v36  ;;  %v255_v37 = vld [vmem:[%s4624_s7 + $0x154] sm:$0xf]  ;;  %v257_v38 = vld [vmem:[%s4624_s7 + $0x1dc] sm:$0xf] }
  0x45   :  { %v259_v39 = vld [vmem:[%s4624_s7 + $0x158] sm:$0xf]  ;;  %256 = vst [vmem:[#allocation2 + $0x198] sm:$0xf] %v255_v37  ;;  %258 = vst [vmem:[#allocation2 + $0x19c] sm:$0xf] %v257_v38 }
  0x46   :  { %260 = vst [vmem:[#allocation2 + $0x1a0] sm:$0xf] %v259_v39  ;;  %v261_v40 = vld [vmem:[%s4624_s7 + $0x1e0] sm:$0xf]  ;;  %v263_v41 = vld [vmem:[%s4624_s7 + $0x15c] sm:$0xf] }
  0x47   :  { %v265_v42 = vld [vmem:[%s4624_s7 + $0x1e4] sm:$0xf]  ;;  %262 = vst [vmem:[#allocation2 + $0x1a4] sm:$0xf] %v261_v40  ;;  %264 = vst [vmem:[#allocation2 + $0x1a8] sm:$0xf] %v263_v41 }
  0x48   :  { %266 = vst [vmem:[#allocation2 + $0x1ac] sm:$0xf] %v265_v42  ;;  %v267_v43 = vld [vmem:[%s4624_s7 + $0x160] sm:$0xf]  ;;  %v269_v44 = vld [vmem:[%s4624_s7 + $0x1e8] sm:$0xf] }
  0x49   :  { %v271_v45 = vld [vmem:[%s4624_s7 + $0x164] sm:$0xf]  ;;  %268 = vst [vmem:[#allocation2 + $0x1b0] sm:$0xf] %v267_v43  ;;  %270 = vst [vmem:[#allocation2 + $0x1b4] sm:$0xf] %v269_v44 }
  0x4a   :  { %272 = vst [vmem:[#allocation2 + $0x1b8] sm:$0xf] %v271_v45  ;;  %v273_v46 = vld [vmem:[%s4624_s7 + $0x1ec] sm:$0xf]  ;;  %v275_v47 = vld [vmem:[%s4624_s7 + $0x168] sm:$0xf] }
  0x4b   :  { %v277_v48 = vld [vmem:[%s4624_s7 + $0x1f0] sm:$0xf]  ;;  %274 = vst [vmem:[#allocation2 + $0x1bc] sm:$0xf] %v273_v46  ;;  %276 = vst [vmem:[#allocation2 + $0x1c0] sm:$0xf] %v275_v47 }
  0x4c   :  { %278 = vst [vmem:[#allocation2 + $0x1c4] sm:$0xf] %v277_v48  ;;  %v279_v49 = vld [vmem:[%s4624_s7 + $0x16c] sm:$0xf]  ;;  %v281_v50 = vld [vmem:[%s4624_s7 + $0x1f4] sm:$0xf] }
  0x4d   :  { %v283_v51 = vld [vmem:[%s4624_s7 + $0x170] sm:$0xf]  ;;  %280 = vst [vmem:[#allocation2 + $0x1c8] sm:$0xf] %v279_v49  ;;  %282 = vst [vmem:[#allocation2 + $0x1cc] sm:$0xf] %v281_v50 }
  0x4e   :  { %284 = vst [vmem:[#allocation2 + $0x1d0] sm:$0xf] %v283_v51  ;;  %v285_v52 = vld [vmem:[%s4624_s7 + $0x1f8] sm:$0xf]  ;;  %v287_v53 = vld [vmem:[%s4624_s7 + $0x174] sm:$0xf] }
  0x4f   :  { %v289_v54 = vld [vmem:[%s4624_s7 + $0x1fc] sm:$0xf]  ;;  %286 = vst [vmem:[#allocation2 + $0x1d4] sm:$0xf] %v285_v52  ;;  %288 = vst [vmem:[#allocation2 + $0x1d8] sm:$0xf] %v287_v53 }
  0x50   :  { %290 = vst [vmem:[#allocation2 + $0x1dc] sm:$0xf] %v289_v54  ;;  %v291_v55 = vld [vmem:[%s4624_s7 + $0x178] sm:$0xf]  ;;  %v293_v56 = vld [vmem:[%s4624_s7 + $0x200] sm:$0xf] }
  0x51   :  { %v295_v57 = vld [vmem:[%s4624_s7 + $0x17c] sm:$0xf]  ;;  %292 = vst [vmem:[#allocation2 + $0x1e0] sm:$0xf] %v291_v55  ;;  %294 = vst [vmem:[#allocation2 + $0x1e4] sm:$0xf] %v293_v56 }
  0x52   :  { %296 = vst [vmem:[#allocation2 + $0x1e8] sm:$0xf] %v295_v57  ;;  %v297_v58 = vld [vmem:[%s4624_s7 + $0x204] sm:$0xf]  ;;  %v299_v59 = vld [vmem:[%s4624_s7 + $0x180] sm:$0xf] }
  0x53   :  { %v301_v60 = vld [vmem:[%s4624_s7 + $0x208] sm:$0xf]  ;;  %298 = vst [vmem:[#allocation2 + $0x1ec] sm:$0xf] %v297_v58  ;;  %300 = vst [vmem:[#allocation2 + $0x1f0] sm:$0xf] %v299_v59 }
  0x54   :  { %302 = vst [vmem:[#allocation2 + $0x1f4] sm:$0xf] %v301_v60  ;;  %v303_v61 = vld [vmem:[%s4624_s7 + $0x184] sm:$0xf]  ;;  %v305_v62 = vld [vmem:[%s4624_s7 + $0x20c] sm:$0xf] }
  0x55   :  { %v307_v63 = vld [vmem:[%s4624_s7 + $0x188] sm:$0xf]  ;;  %304 = vst [vmem:[#allocation2 + $0x1f8] sm:$0xf] %v303_v61  ;;  %306 = vst [vmem:[#allocation2 + $0x1fc] sm:$0xf] %v305_v62 }
  0x56   :  { %308 = vst [vmem:[#allocation2 + $0x200] sm:$0xf] %v307_v63  ;;  %v309_v0 = vld [vmem:[%s4624_s7 + $0x210] sm:$0xf]  ;;  %v311_v1 = vld [vmem:[%s4624_s7 + $0x18c] sm:$0xf] }
  0x57   :  { %v313_v2 = vld [vmem:[%s4624_s7 + $0x214] sm:$0xf]  ;;  %310 = vst [vmem:[#allocation2 + $0x204] sm:$0xf] %v309_v0  ;;  %312 = vst [vmem:[#allocation2 + $0x208] sm:$0xf] %v311_v1 }
  0x58   :  { %314 = vst [vmem:[#allocation2 + $0x20c] sm:$0xf] %v313_v2  ;;  %v315_v3 = vld [vmem:[%s4624_s7 + $0x190] sm:$0xf]  ;;  %v317_v4 = vld [vmem:[%s4624_s7 + $0x218] sm:$0xf] }
  0x59   :  { %v319_v5 = vld [vmem:[%s4624_s7 + $0x194] sm:$0xf]  ;;  %316 = vst [vmem:[#allocation2 + $0x210] sm:$0xf] %v315_v3  ;;  %318 = vst [vmem:[#allocation2 + $0x214] sm:$0xf] %v317_v4 }
  0x5a   :  { %320 = vst [vmem:[#allocation2 + $0x218] sm:$0xf] %v319_v5  ;;  %v321_v6 = vld [vmem:[%s4624_s7 + $0x21c] sm:$0xff]   ;;  %v325_v7 = vld [vmem:[%s4624_s7 + $0x2a8] sm:$0xf] }
  0x5b   :  { %v327_v8 = vld [vmem:[%s4624_s7 + $0x224] sm:$0xf]  ;;  %322 = vst [vmem:[#allocation2 + $0x21c] sm:$0xff] %v321_v6   ;;  %326 = vst [vmem:[#allocation2 + $0x224] sm:$0xf] %v325_v7 }
  0x5c   :  { %328 = vst [vmem:[#allocation2 + $0x228] sm:$0xf] %v327_v8  ;;  %v329_v9 = vld [vmem:[%s4624_s7 + $0x2ac] sm:$0xf]  ;;  %v331_v10 = vld [vmem:[%s4624_s7 + $0x228] sm:$0xf] }
  0x5d   :  { %v333_v11 = vld [vmem:[%s4624_s7 + $0x2b0] sm:$0xf]  ;;  %330 = vst [vmem:[#allocation2 + $0x22c] sm:$0xf] %v329_v9  ;;  %332 = vst [vmem:[#allocation2 + $0x230] sm:$0xf] %v331_v10 }
  0x5e   :  { %334 = vst [vmem:[#allocation2 + $0x234] sm:$0xf] %v333_v11  ;;  %v335_v12 = vld [vmem:[%s4624_s7 + $0x22c] sm:$0xf]  ;;  %v337_v13 = vld [vmem:[%s4624_s7 + $0x2b4] sm:$0xf] }
  0x5f   :  { %v339_v14 = vld [vmem:[%s4624_s7 + $0x230] sm:$0xf]  ;;  %336 = vst [vmem:[#allocation2 + $0x238] sm:$0xf] %v335_v12  ;;  %338 = vst [vmem:[#allocation2 + $0x23c] sm:$0xf] %v337_v13 }
  0x60   :  { %340 = vst [vmem:[#allocation2 + $0x240] sm:$0xf] %v339_v14  ;;  %v341_v15 = vld [vmem:[%s4624_s7 + $0x2b8] sm:$0xf]  ;;  %v343_v16 = vld [vmem:[%s4624_s7 + $0x234] sm:$0xf] }
  0x61   :  { %v345_v17 = vld [vmem:[%s4624_s7 + $0x2bc] sm:$0xf]  ;;  %342 = vst [vmem:[#allocation2 + $0x244] sm:$0xf] %v341_v15  ;;  %344 = vst [vmem:[#allocation2 + $0x248] sm:$0xf] %v343_v16 }
  0x62   :  { %346 = vst [vmem:[#allocation2 + $0x24c] sm:$0xf] %v345_v17  ;;  %v347_v18 = vld [vmem:[%s4624_s7 + $0x238] sm:$0xf]  ;;  %v349_v19 = vld [vmem:[%s4624_s7 + $0x2c0] sm:$0xf] }
  0x63   :  { %v351_v20 = vld [vmem:[%s4624_s7 + $0x23c] sm:$0xf]  ;;  %348 = vst [vmem:[#allocation2 + $0x250] sm:$0xf] %v347_v18  ;;  %350 = vst [vmem:[#allocation2 + $0x254] sm:$0xf] %v349_v19 }
  0x64   :  { %352 = vst [vmem:[#allocation2 + $0x258] sm:$0xf] %v351_v20  ;;  %v353_v21 = vld [vmem:[%s4624_s7 + $0x2c4] sm:$0xf]  ;;  %v355_v22 = vld [vmem:[%s4624_s7 + $0x240] sm:$0xf] }
  0x65   :  { %v357_v23 = vld [vmem:[%s4624_s7 + $0x2c8] sm:$0xf]  ;;  %354 = vst [vmem:[#allocation2 + $0x25c] sm:$0xf] %v353_v21  ;;  %356 = vst [vmem:[#allocation2 + $0x260] sm:$0xf] %v355_v22 }
  0x66   :  { %358 = vst [vmem:[#allocation2 + $0x264] sm:$0xf] %v357_v23  ;;  %v359_v24 = vld [vmem:[%s4624_s7 + $0x244] sm:$0xf]  ;;  %v361_v25 = vld [vmem:[%s4624_s7 + $0x2cc] sm:$0xf] }
  0x67   :  { %v363_v26 = vld [vmem:[%s4624_s7 + $0x248] sm:$0xf]  ;;  %360 = vst [vmem:[#allocation2 + $0x268] sm:$0xf] %v359_v24  ;;  %362 = vst [vmem:[#allocation2 + $0x26c] sm:$0xf] %v361_v25 }
  0x68   :  { %364 = vst [vmem:[#allocation2 + $0x270] sm:$0xf] %v363_v26  ;;  %v365_v27 = vld [vmem:[%s4624_s7 + $0x2d0] sm:$0xf]  ;;  %v367_v28 = vld [vmem:[%s4624_s7 + $0x24c] sm:$0xf] }
  0x69   :  { %v369_v29 = vld [vmem:[%s4624_s7 + $0x2d4] sm:$0xf]  ;;  %366 = vst [vmem:[#allocation2 + $0x274] sm:$0xf] %v365_v27  ;;  %368 = vst [vmem:[#allocation2 + $0x278] sm:$0xf] %v367_v28 }
  0x6a   :  { %370 = vst [vmem:[#allocation2 + $0x27c] sm:$0xf] %v369_v29  ;;  %v371_v30 = vld [vmem:[%s4624_s7 + $0x250] sm:$0xf]  ;;  %v373_v31 = vld [vmem:[%s4624_s7 + $0x2d8] sm:$0xf] }
  0x6b   :  { %v375_v32 = vld [vmem:[%s4624_s7 + $0x254] sm:$0xf]  ;;  %372 = vst [vmem:[#allocation2 + $0x280] sm:$0xf] %v371_v30  ;;  %374 = vst [vmem:[#allocation2 + $0x284] sm:$0xf] %v373_v31 }
  0x6c   :  { %376 = vst [vmem:[#allocation2 + $0x288] sm:$0xf] %v375_v32  ;;  %v377_v33 = vld [vmem:[%s4624_s7 + $0x2dc] sm:$0xf]  ;;  %v379_v34 = vld [vmem:[%s4624_s7 + $0x258] sm:$0xf] }
  0x6d   :  { %v381_v35 = vld [vmem:[%s4624_s7 + $0x2e0] sm:$0xf]  ;;  %378 = vst [vmem:[#allocation2 + $0x28c] sm:$0xf] %v377_v33  ;;  %380 = vst [vmem:[#allocation2 + $0x290] sm:$0xf] %v379_v34 }
  0x6e   :  { %382 = vst [vmem:[#allocation2 + $0x294] sm:$0xf] %v381_v35  ;;  %v383_v36 = vld [vmem:[%s4624_s7 + $0x25c] sm:$0xf]  ;;  %v385_v37 = vld [vmem:[%s4624_s7 + $0x2e4] sm:$0xf] }
  0x6f   :  { %v387_v38 = vld [vmem:[%s4624_s7 + $0x260] sm:$0xf]  ;;  %384 = vst [vmem:[#allocation2 + $0x298] sm:$0xf] %v383_v36  ;;  %386 = vst [vmem:[#allocation2 + $0x29c] sm:$0xf] %v385_v37 }
  0x70   :  { %388 = vst [vmem:[#allocation2 + $0x2a0] sm:$0xf] %v387_v38  ;;  %v389_v39 = vld [vmem:[%s4624_s7 + $0x2e8] sm:$0xf]  ;;  %v391_v40 = vld [vmem:[%s4624_s7 + $0x264] sm:$0xf] }
  0x71   :  { %v393_v41 = vld [vmem:[%s4624_s7 + $0x2ec] sm:$0xf]  ;;  %390 = vst [vmem:[#allocation2 + $0x2a4] sm:$0xf] %v389_v39  ;;  %392 = vst [vmem:[#allocation2 + $0x2a8] sm:$0xf] %v391_v40 }
  0x72   :  { %394 = vst [vmem:[#allocation2 + $0x2ac] sm:$0xf] %v393_v41  ;;  %v395_v42 = vld [vmem:[%s4624_s7 + $0x268] sm:$0xf]  ;;  %v397_v43 = vld [vmem:[%s4624_s7 + $0x2f0] sm:$0xf] }
  0x73   :  { %v399_v44 = vld [vmem:[%s4624_s7 + $0x26c] sm:$0xf]  ;;  %396 = vst [vmem:[#allocation2 + $0x2b0] sm:$0xf] %v395_v42  ;;  %398 = vst [vmem:[#allocation2 + $0x2b4] sm:$0xf] %v397_v43 }
  0x74   :  { %400 = vst [vmem:[#allocation2 + $0x2b8] sm:$0xf] %v399_v44  ;;  %v401_v45 = vld [vmem:[%s4624_s7 + $0x2f4] sm:$0xf]  ;;  %v403_v46 = vld [vmem:[%s4624_s7 + $0x270] sm:$0xf] }
  0x75   :  { %v405_v47 = vld [vmem:[%s4624_s7 + $0x2f8] sm:$0xf]  ;;  %402 = vst [vmem:[#allocation2 + $0x2bc] sm:$0xf] %v401_v45  ;;  %404 = vst [vmem:[#allocation2 + $0x2c0] sm:$0xf] %v403_v46 }
  0x76   :  { %406 = vst [vmem:[#allocation2 + $0x2c4] sm:$0xf] %v405_v47  ;;  %v407_v48 = vld [vmem:[%s4624_s7 + $0x274] sm:$0xf]  ;;  %v409_v49 = vld [vmem:[%s4624_s7 + $0x2fc] sm:$0xf] }
  0x77   :  { %v411_v50 = vld [vmem:[%s4624_s7 + $0x278] sm:$0xf]  ;;  %408 = vst [vmem:[#allocation2 + $0x2c8] sm:$0xf] %v407_v48  ;;  %410 = vst [vmem:[#allocation2 + $0x2cc] sm:$0xf] %v409_v49 }
  0x78   :  { %412 = vst [vmem:[#allocation2 + $0x2d0] sm:$0xf] %v411_v50  ;;  %v413_v51 = vld [vmem:[%s4624_s7 + $0x300] sm:$0xf]  ;;  %v415_v52 = vld [vmem:[%s4624_s7 + $0x27c] sm:$0xf] }
  0x79   :  { %v417_v53 = vld [vmem:[%s4624_s7 + $0x304] sm:$0xf]  ;;  %414 = vst [vmem:[#allocation2 + $0x2d4] sm:$0xf] %v413_v51  ;;  %416 = vst [vmem:[#allocation2 + $0x2d8] sm:$0xf] %v415_v52 }
  0x7a   :  { %418 = vst [vmem:[#allocation2 + $0x2dc] sm:$0xf] %v417_v53  ;;  %v419_v54 = vld [vmem:[%s4624_s7 + $0x280] sm:$0xf]  ;;  %v421_v55 = vld [vmem:[%s4624_s7 + $0x308] sm:$0xf] }
  0x7b   :  { %v423_v56 = vld [vmem:[%s4624_s7 + $0x284] sm:$0xf]  ;;  %420 = vst [vmem:[#allocation2 + $0x2e0] sm:$0xf] %v419_v54  ;;  %422 = vst [vmem:[#allocation2 + $0x2e4] sm:$0xf] %v421_v55 }
  0x7c   :  { %424 = vst [vmem:[#allocation2 + $0x2e8] sm:$0xf] %v423_v56  ;;  %v425_v57 = vld [vmem:[%s4624_s7 + $0x30c] sm:$0xf]  ;;  %v427_v58 = vld [vmem:[%s4624_s7 + $0x288] sm:$0xf] }
  0x7d   :  { %v429_v59 = vld [vmem:[%s4624_s7 + $0x310] sm:$0xf]  ;;  %426 = vst [vmem:[#allocation2 + $0x2ec] sm:$0xf] %v425_v57  ;;  %428 = vst [vmem:[#allocation2 + $0x2f0] sm:$0xf] %v427_v58 }
  0x7e   :  { %430 = vst [vmem:[#allocation2 + $0x2f4] sm:$0xf] %v429_v59  ;;  %v431_v60 = vld [vmem:[%s4624_s7 + $0x28c] sm:$0xf]  ;;  %v433_v61 = vld [vmem:[%s4624_s7 + $0x314] sm:$0xf] }
  0x7f   :  { %v435_v62 = vld [vmem:[%s4624_s7 + $0x290] sm:$0xf]  ;;  %432 = vst [vmem:[#allocation2 + $0x2f8] sm:$0xf] %v431_v60  ;;  %434 = vst [vmem:[#allocation2 + $0x2fc] sm:$0xf] %v433_v61 }
  0x80   :  { %436 = vst [vmem:[#allocation2 + $0x300] sm:$0xf] %v435_v62  ;;  %v437_v63 = vld [vmem:[%s4624_s7 + $0x318] sm:$0xf]  ;;  %v439_v0 = vld [vmem:[%s4624_s7 + $0x294] sm:$0xf] }
  0x81   :  { %v441_v1 = vld [vmem:[%s4624_s7 + $0x31c] sm:$0xf]  ;;  %438 = vst [vmem:[#allocation2 + $0x304] sm:$0xf] %v437_v63  ;;  %440 = vst [vmem:[#allocation2 + $0x308] sm:$0xf] %v439_v0 }
  0x82   :  { %442 = vst [vmem:[#allocation2 + $0x30c] sm:$0xf] %v441_v1  ;;  %v443_v2 = vld [vmem:[%s4624_s7 + $0x298] sm:$0xf]  ;;  %v445_v3 = vld [vmem:[%s4624_s7 + $0x320] sm:$0xf] }
  0x83   :  { %v447_v4 = vld [vmem:[%s4624_s7 + $0x29c] sm:$0xf]  ;;  %444 = vst [vmem:[#allocation2 + $0x310] sm:$0xf] %v443_v2  ;;  %446 = vst [vmem:[#allocation2 + $0x314] sm:$0xf] %v445_v3 }
  0x84   :  { %448 = vst [vmem:[#allocation2 + $0x318] sm:$0xf] %v447_v4  ;;  %v449_v5 = vld [vmem:[%s4624_s7 + $0x324] sm:$0xf]  ;;  %v451_v6 = vld [vmem:[%s4624_s7 + $0x2a0] sm:$0xf] }
  0x85   :  { %v453_v7 = vld [vmem:[%s4624_s7 + $0x328] sm:$0xf]  ;;  %450 = vst [vmem:[#allocation2 + $0x31c] sm:$0xf] %v449_v5  ;;  %452 = vst [vmem:[#allocation2 + $0x320] sm:$0xf] %v451_v6 }
  0x86   :  { %454 = vst [vmem:[#allocation2 + $0x324] sm:$0xf] %v453_v7  ;;  %v455_v8 = vld [vmem:[%s4624_s7 + $0x2a4] sm:$0xf]  ;;  %v457_v9 = vld [vmem:[%s4624_s7 + $0x32c] sm:$0xff]  }
  0x87   :  { %v461_v10 = vld [vmem:[%s4624_s7 + $0x3b8] sm:$0xf]  ;;  %456 = vst [vmem:[#allocation2 + $0x328] sm:$0xf] %v455_v8  ;;  %458 = vst [vmem:[#allocation2 + $0x32c] sm:$0xff] %v457_v9  }
  0x88   :  { %462 = vst [vmem:[#allocation2 + $0x334] sm:$0xf] %v461_v10  ;;  %v463_v11 = vld [vmem:[%s4624_s7 + $0x334] sm:$0xf]  ;;  %v465_v12 = vld [vmem:[%s4624_s7 + $0x3bc] sm:$0xf] }
  0x89   :  { %v467_v13 = vld [vmem:[%s4624_s7 + $0x338] sm:$0xf]  ;;  %464 = vst [vmem:[#allocation2 + $0x338] sm:$0xf] %v463_v11  ;;  %466 = vst [vmem:[#allocation2 + $0x33c] sm:$0xf] %v465_v12 }
  0x8a   :  { %468 = vst [vmem:[#allocation2 + $0x340] sm:$0xf] %v467_v13  ;;  %v469_v14 = vld [vmem:[%s4624_s7 + $0x3c0] sm:$0xf]  ;;  %v471_v15 = vld [vmem:[%s4624_s7 + $0x33c] sm:$0xf] }
  0x8b   :  { %v473_v16 = vld [vmem:[%s4624_s7 + $0x3c4] sm:$0xf]  ;;  %470 = vst [vmem:[#allocation2 + $0x344] sm:$0xf] %v469_v14  ;;  %472 = vst [vmem:[#allocation2 + $0x348] sm:$0xf] %v471_v15 }
  0x8c   :  { %474 = vst [vmem:[#allocation2 + $0x34c] sm:$0xf] %v473_v16  ;;  %v475_v17 = vld [vmem:[%s4624_s7 + $0x340] sm:$0xf]  ;;  %v477_v18 = vld [vmem:[%s4624_s7 + $0x3c8] sm:$0xf] }
  0x8d   :  { %v479_v19 = vld [vmem:[%s4624_s7 + $0x344] sm:$0xf]  ;;  %476 = vst [vmem:[#allocation2 + $0x350] sm:$0xf] %v475_v17  ;;  %478 = vst [vmem:[#allocation2 + $0x354] sm:$0xf] %v477_v18 }
  0x8e   :  { %480 = vst [vmem:[#allocation2 + $0x358] sm:$0xf] %v479_v19  ;;  %v481_v20 = vld [vmem:[%s4624_s7 + $0x3cc] sm:$0xf]  ;;  %v483_v21 = vld [vmem:[%s4624_s7 + $0x348] sm:$0xf] }
  0x8f   :  { %v485_v22 = vld [vmem:[%s4624_s7 + $0x3d0] sm:$0xf]  ;;  %482 = vst [vmem:[#allocation2 + $0x35c] sm:$0xf] %v481_v20  ;;  %484 = vst [vmem:[#allocation2 + $0x360] sm:$0xf] %v483_v21 }
  0x90   :  { %486 = vst [vmem:[#allocation2 + $0x364] sm:$0xf] %v485_v22  ;;  %v487_v23 = vld [vmem:[%s4624_s7 + $0x34c] sm:$0xf]  ;;  %v489_v24 = vld [vmem:[%s4624_s7 + $0x3d4] sm:$0xf] }
  0x91   :  { %v491_v25 = vld [vmem:[%s4624_s7 + $0x350] sm:$0xf]  ;;  %488 = vst [vmem:[#allocation2 + $0x368] sm:$0xf] %v487_v23  ;;  %490 = vst [vmem:[#allocation2 + $0x36c] sm:$0xf] %v489_v24 }
  0x92   :  { %492 = vst [vmem:[#allocation2 + $0x370] sm:$0xf] %v491_v25  ;;  %v493_v26 = vld [vmem:[%s4624_s7 + $0x3d8] sm:$0xf]  ;;  %v495_v27 = vld [vmem:[%s4624_s7 + $0x354] sm:$0xf] }
  0x93   :  { %v497_v28 = vld [vmem:[%s4624_s7 + $0x3dc] sm:$0xf]  ;;  %494 = vst [vmem:[#allocation2 + $0x374] sm:$0xf] %v493_v26  ;;  %496 = vst [vmem:[#allocation2 + $0x378] sm:$0xf] %v495_v27 }
  0x94   :  { %498 = vst [vmem:[#allocation2 + $0x37c] sm:$0xf] %v497_v28  ;;  %v499_v29 = vld [vmem:[%s4624_s7 + $0x358] sm:$0xf]  ;;  %v501_v30 = vld [vmem:[%s4624_s7 + $0x3e0] sm:$0xf] }
  0x95   :  { %v503_v31 = vld [vmem:[%s4624_s7 + $0x35c] sm:$0xf]  ;;  %500 = vst [vmem:[#allocation2 + $0x380] sm:$0xf] %v499_v29  ;;  %502 = vst [vmem:[#allocation2 + $0x384] sm:$0xf] %v501_v30 }
  0x96   :  { %504 = vst [vmem:[#allocation2 + $0x388] sm:$0xf] %v503_v31  ;;  %v505_v32 = vld [vmem:[%s4624_s7 + $0x3e4] sm:$0xf]  ;;  %v507_v33 = vld [vmem:[%s4624_s7 + $0x360] sm:$0xf] }
  0x97   :  { %v509_v34 = vld [vmem:[%s4624_s7 + $0x3e8] sm:$0xf]  ;;  %506 = vst [vmem:[#allocation2 + $0x38c] sm:$0xf] %v505_v32  ;;  %508 = vst [vmem:[#allocation2 + $0x390] sm:$0xf] %v507_v33 }
  0x98   :  { %510 = vst [vmem:[#allocation2 + $0x394] sm:$0xf] %v509_v34  ;;  %v511_v35 = vld [vmem:[%s4624_s7 + $0x364] sm:$0xf]  ;;  %v513_v36 = vld [vmem:[%s4624_s7 + $0x3ec] sm:$0xf] }
  0x99   :  { %v515_v37 = vld [vmem:[%s4624_s7 + $0x368] sm:$0xf]  ;;  %512 = vst [vmem:[#allocation2 + $0x398] sm:$0xf] %v511_v35  ;;  %514 = vst [vmem:[#allocation2 + $0x39c] sm:$0xf] %v513_v36 }
  0x9a   :  { %516 = vst [vmem:[#allocation2 + $0x3a0] sm:$0xf] %v515_v37  ;;  %v517_v38 = vld [vmem:[%s4624_s7 + $0x3f0] sm:$0xf]  ;;  %v519_v39 = vld [vmem:[%s4624_s7 + $0x36c] sm:$0xf] }
  0x9b   :  { %v521_v40 = vld [vmem:[%s4624_s7 + $0x3f4] sm:$0xf]  ;;  %518 = vst [vmem:[#allocation2 + $0x3a4] sm:$0xf] %v517_v38  ;;  %520 = vst [vmem:[#allocation2 + $0x3a8] sm:$0xf] %v519_v39 }
  0x9c   :  { %522 = vst [vmem:[#allocation2 + $0x3ac] sm:$0xf] %v521_v40  ;;  %v523_v41 = vld [vmem:[%s4624_s7 + $0x370] sm:$0xf]  ;;  %v525_v42 = vld [vmem:[%s4624_s7 + $0x3f8] sm:$0xf] }
  0x9d   :  { %v527_v43 = vld [vmem:[%s4624_s7 + $0x374] sm:$0xf]  ;;  %524 = vst [vmem:[#allocation2 + $0x3b0] sm:$0xf] %v523_v41  ;;  %526 = vst [vmem:[#allocation2 + $0x3b4] sm:$0xf] %v525_v42 }
  0x9e   :  { %528 = vst [vmem:[#allocation2 + $0x3b8] sm:$0xf] %v527_v43  ;;  %v529_v44 = vld [vmem:[%s4624_s7 + $0x3fc] sm:$0xf]  ;;  %v531_v45 = vld [vmem:[%s4624_s7 + $0x378] sm:$0xf] }
  0x9f   :  { %v533_v46 = vld [vmem:[%s4624_s7 + $0x400] sm:$0xf]  ;;  %530 = vst [vmem:[#allocation2 + $0x3bc] sm:$0xf] %v529_v44  ;;  %532 = vst [vmem:[#allocation2 + $0x3c0] sm:$0xf] %v531_v45 }
  0xa0   :  { %534 = vst [vmem:[#allocation2 + $0x3c4] sm:$0xf] %v533_v46  ;;  %v535_v47 = vld [vmem:[%s4624_s7 + $0x37c] sm:$0xf]  ;;  %v537_v48 = vld [vmem:[%s4624_s7 + $0x404] sm:$0xf] }
  0xa1   :  { %v539_v49 = vld [vmem:[%s4624_s7 + $0x380] sm:$0xf]  ;;  %536 = vst [vmem:[#allocation2 + $0x3c8] sm:$0xf] %v535_v47  ;;  %538 = vst [vmem:[#allocation2 + $0x3cc] sm:$0xf] %v537_v48 }
  0xa2   :  { %540 = vst [vmem:[#allocation2 + $0x3d0] sm:$0xf] %v539_v49  ;;  %v541_v50 = vld [vmem:[%s4624_s7 + $0x408] sm:$0xf]  ;;  %v543_v51 = vld [vmem:[%s4624_s7 + $0x384] sm:$0xf] }
  0xa3   :  { %v545_v52 = vld [vmem:[%s4624_s7 + $0x40c] sm:$0xf]  ;;  %542 = vst [vmem:[#allocation2 + $0x3d4] sm:$0xf] %v541_v50  ;;  %544 = vst [vmem:[#allocation2 + $0x3d8] sm:$0xf] %v543_v51 }
  0xa4   :  { %546 = vst [vmem:[#allocation2 + $0x3dc] sm:$0xf] %v545_v52  ;;  %v547_v53 = vld [vmem:[%s4624_s7 + $0x388] sm:$0xf]  ;;  %v549_v54 = vld [vmem:[%s4624_s7 + $0x410] sm:$0xf] }
  0xa5   :  { %v551_v55 = vld [vmem:[%s4624_s7 + $0x38c] sm:$0xf]  ;;  %548 = vst [vmem:[#allocation2 + $0x3e0] sm:$0xf] %v547_v53  ;;  %550 = vst [vmem:[#allocation2 + $0x3e4] sm:$0xf] %v549_v54 }
  0xa6   :  { %552 = vst [vmem:[#allocation2 + $0x3e8] sm:$0xf] %v551_v55  ;;  %v553_v56 = vld [vmem:[%s4624_s7 + $0x414] sm:$0xf]  ;;  %v555_v57 = vld [vmem:[%s4624_s7 + $0x390] sm:$0xf] }
  0xa7   :  { %v557_v58 = vld [vmem:[%s4624_s7 + $0x418] sm:$0xf]  ;;  %554 = vst [vmem:[#allocation2 + $0x3ec] sm:$0xf] %v553_v56  ;;  %556 = vst [vmem:[#allocation2 + $0x3f0] sm:$0xf] %v555_v57 }
  0xa8   :  { %558 = vst [vmem:[#allocation2 + $0x3f4] sm:$0xf] %v557_v58  ;;  %v559_v59 = vld [vmem:[%s4624_s7 + $0x394] sm:$0xf]  ;;  %v561_v60 = vld [vmem:[%s4624_s7 + $0x41c] sm:$0xf] }
  0xa9   :  { %v563_v61 = vld [vmem:[%s4624_s7 + $0x398] sm:$0xf]  ;;  %560 = vst [vmem:[#allocation2 + $0x3f8] sm:$0xf] %v559_v59  ;;  %562 = vst [vmem:[#allocation2 + $0x3fc] sm:$0xf] %v561_v60 }
  0xaa   :  { %564 = vst [vmem:[#allocation2 + $0x400] sm:$0xf] %v563_v61  ;;  %v565_v62 = vld [vmem:[%s4624_s7 + $0x420] sm:$0xf]  ;;  %v567_v63 = vld [vmem:[%s4624_s7 + $0x39c] sm:$0xf] }
  0xab   :  { %v569_v0 = vld [vmem:[%s4624_s7 + $0x424] sm:$0xf]  ;;  %566 = vst [vmem:[#allocation2 + $0x404] sm:$0xf] %v565_v62  ;;  %568 = vst [vmem:[#allocation2 + $0x408] sm:$0xf] %v567_v63 }
  0xac   :  { %570 = vst [vmem:[#allocation2 + $0x40c] sm:$0xf] %v569_v0  ;;  %v571_v1 = vld [vmem:[%s4624_s7 + $0x3a0] sm:$0xf]  ;;  %v573_v2 = vld [vmem:[%s4624_s7 + $0x428] sm:$0xf] }
  0xad   :  { %v575_v3 = vld [vmem:[%s4624_s7 + $0x3a4] sm:$0xf]  ;;  %572 = vst [vmem:[#allocation2 + $0x410] sm:$0xf] %v571_v1  ;;  %574 = vst [vmem:[#allocation2 + $0x414] sm:$0xf] %v573_v2 }
  0xae   :  { %576 = vst [vmem:[#allocation2 + $0x418] sm:$0xf] %v575_v3  ;;  %v577_v4 = vld [vmem:[%s4624_s7 + $0x42c] sm:$0xf]  ;;  %v579_v5 = vld [vmem:[%s4624_s7 + $0x3a8] sm:$0xf] }
  0xaf   :  { %v581_v6 = vld [vmem:[%s4624_s7 + $0x430] sm:$0xf]  ;;  %578 = vst [vmem:[#allocation2 + $0x41c] sm:$0xf] %v577_v4  ;;  %580 = vst [vmem:[#allocation2 + $0x420] sm:$0xf] %v579_v5 }
  0xb0   :  { %582 = vst [vmem:[#allocation2 + $0x424] sm:$0xf] %v581_v6  ;;  %v583_v7 = vld [vmem:[%s4624_s7 + $0x3ac] sm:$0xf]  ;;  %v585_v8 = vld [vmem:[%s4624_s7 + $0x434] sm:$0xf] }
  0xb1   :  { %v587_v9 = vld [vmem:[%s4624_s7 + $0x3b0] sm:$0xf]  ;;  %584 = vst [vmem:[#allocation2 + $0x428] sm:$0xf] %v583_v7  ;;  %586 = vst [vmem:[#allocation2 + $0x42c] sm:$0xf] %v585_v8 }
  0xb2   :  { %588 = vst [vmem:[#allocation2 + $0x430] sm:$0xf] %v587_v9  ;;  %v589_v10 = vld [vmem:[%s4624_s7 + $0x438] sm:$0xf]  ;;  %v591_v11 = vld [vmem:[%s4624_s7 + $0x3b4] sm:$0xf] }
  0xb3   :  { %v593_v12 = vld [vmem:[%s4624_s7 + $0x43c] sm:$0xf]  ;;  %590 = vst [vmem:[#allocation2 + $0x434] sm:$0xf] %v589_v10  ;;  %592 = vst [vmem:[#allocation2 + $0x438] sm:$0xf] %v591_v11 }
  0xb4   :  { %594 = vst [vmem:[#allocation2 + $0x43c] sm:$0xf] %v593_v12  ;;  %v1176_v13 = vld [vmem:[%s4617_s0] sm:$0xff]  ;;  %v3445_v14 = vmov 0  }
  0xb5   :  { %3386 = vset.pattern.permute.xlu0 %v3445_v14 }
  0xb6   :  { %1169 = vsyncadd [#allocation3], 17408  ;;  %1181 = vperm.xlu0 %3386, %v1176_v13   ;;  %v1177_v15 = vld [vmem:[%s4617_s0 + $0x8] sm:$0xff]  ;;  %v3446_v16 = vmov 0.0   ;;  %v1197_v17 = vlaneseq  ;;  %v4330_v21 = vld [vmem:[%s4621_s4] sm:$0xff]  ;;  %vm1203_vm0 = vcmask 261120  }
  0xb7   :  { %3317 = vmatprep.subr.bf16.mxu0 %v3446_v16  ;;  %v3263_v22 = vld [vmem:[%s4622_s5] ss:$0 sm:$0xff]  ;;  %v1171_v41 = vld [vmem:[%s4618_s1 + $0x4] sm:$0xf]  ;;  %vm1276_vm6 = vcmask 130048   ;;  %vm3447_vm8 = vmmov 0  }
  0xb8   :  { %v4319_v18 = vshrl.u32 %v1197_v17, 7  ;;  %v1170_v40 = vld [vmem:[%s4618_s1] sm:$0xf]  ;;  %vm1267_vm2 = vcmp.gt.bf16.partialorder %v1171_v41, 0  ;;  %3319 = vmatprep.mubr.msk.bf16.mxu0 %vm3447_vm8, %v3446_v16  ;;  %3327 = vmatprep.mubr.msk.f32.mxu1 %vm3447_vm8, %v3446_v16  ;;  %v3448_v17 = vmov 0.0|0.0   ;;  %vm1453_vm9 = vcmask 15360  }
  0xb9   :  { %vm1266_vm1 = vcmp.gt.bf16.partialorder %v1170_v40, 0  ;;  %v1269_v46 = vsel %vm1267_vm2, 65537, %v3445_v14  ;;  %3368 = vmatprep.subr.bf16.mxu1 %v3448_v17  ;;  %vm1460_vm10 = vcmask 1041408   ;;  %v3449_v57 = vmov -1e+30  }
  0xba   :  { %1186 = vperm.xlu0 %3386, %v1177_v15   ;;  %v4322_v19 = vsub.s32 1, %v4319_v18  ;;  %v4325_v20 = vsub.s32 0, %v4319_v18  ;;  %v1268_v43 = vsel %vm1266_vm1, 65537, %v3445_v14  ;;  %v1271_v51 = vunpack.c.l.b16 %v1269_v46 }
  0xbb   :  { %v1270_v45 = vunpack.c.l.b16 %v1268_v43  ;;  %vm2004_vm15 = vcmask 1040384  }
  0xbc   :  { %v1213_v23 = vrot.slane %v4330_v21, %v4322_v19  ;;  %v1200_v24 = vrot.slane %v4330_v21, %v4325_v20  ;;  %vm4357_vm7 = vcmp.ne.s32.totalorder %v1271_v51, 0 }
  0xbd   :  { %vm4353_vm3 = vcmp.ne.s32.totalorder %v1270_v45, 0 }
 0x135   :  { %v1182_v25 = vpop.permute.xlu0 %1181 }
 0x136   :  { %v1195_v26 = vmul.f32 %v3263_v22, %v1182_v25 }
 0x138   :  { %v1214_v27 = vmul.f32 %v1213_v23, %v1195_v26  ;;  %v1201_v28 = vmul.f32 %v1200_v24, %v1195_v26 }
 0x139   :  { %v1187_v29 = vpop.permute.xlu0 %1186 }
 0x13a   :  { %v1196_v30 = vmul.f32 %v3263_v22, %v1187_v29  ;;  %v1216_v31 = vsel %vm1203_vm0, %v1214_v27, 0.0  ;;  %v1204_v32 = vsel %vm1203_vm0, %v1201_v28, 0.0  ;;  %v4378_v22 = vsub.s32 2, %v4319_v18 }
 0x13b   :  { %1217 = vadd.xlane.f32.xlu0 %v1216_v31  ;;  %1205 = vadd.xlane.f32.xlu1 %v1204_v32 }
 0x13c   :  { %v1300_v33 = vpack.c.bf16 %v1196_v30, %v1195_v26  ;;  %v1202_v34 = vmul.f32 %v1200_v24, %v1196_v30  ;;  %v1215_v36 = vmul.f32 %v1213_v23, %v1196_v30  ;;  %v1304_v23 = vrot.slane %v4330_v21, %v4378_v22 }
 0x13e   :  { %3318 = vmatpush3.bf16.msra.mxu0 %v1300_v33  ;;  %v1207_v35 = vsel %vm1203_vm0, %v1202_v34, 0.0  ;;  %v1219_v37 = vsel %vm1203_vm0, %v1215_v36, 0.0 }
 0x13f   :  { %1208 = vadd.xlane.f32.xlu1 %v1207_v35  ;;  %3347 = vmatprep.subr.bf16.mxu0 %v3446_v16 }
 0x143   :  { %1220 = vadd.xlane.f32.xlu1 %v1219_v37 }
 0x1c8   :  { %v1206_v38 = vpop.xlane.xlu1 %1205  ;;  %v1218_v48 = vpop.xlane.xlu0 %1217 }
 0x1c9   :  { %1222 = vxpose.xlu1.b32.start [1/2] (short) (narrow) %v1206_v38, 8 }
 0x1cc   :  { %v1209_v39 = vpop.xlane.xlu1 %1208 }
 0x1cd   :  { %1223 = vxpose.xlu1.b32.end [2/2] (short) (narrow) %v1209_v39, 8 }
 0x1d0   :  { %v1221_v42 = vpop.xlane.xlu1 %1220 }
 0x249   :  { %v1238_v44 = vpop.trf.xlu1 }
 0x24a   :  { %v1257_v47 = vrot.slane %v1238_v44, %v4325_v20 }
 0x24c   :  { %v1258_v49 = vadd.f32 %v1257_v47, %v1218_v48  ;;  %v1259_v50 = vadd.f32 %v1257_v47, %v1221_v42 }
 0x24e   :  { %vm1260_vm4 = vcmp.gt.f32.partialorder %v1258_v49, 0.0  ;;  %v1262_v53 = vmul.f32 0.2, %v1258_v49  ;;  %vm1261_vm5 = vcmp.gt.f32.partialorder %v1259_v50, 0.0  ;;  %v1263_v54 = vmul.f32 0.2, %v1259_v50 }
 0x250   :  { %v1264_v55 = vsel %vm1260_vm4, %v1258_v49, %v1262_v53  ;;  %v1265_v56 = vsel %vm1261_vm5, %v1259_v50, %v1263_v54 }
 0x251   :  { %v1274_v58 = vsel %vm4353_vm3, %v1264_v55, -1e+30  ;;  %v1275_v60 = vsel %vm4357_vm7, %v1265_v56, -1e+30 }
 0x252   :  { %v1277_v59 = vsel %vm1276_vm6, %v1274_v58, -inf  ;;  %v1280_v61 = vsel %vm1276_vm6, %v1275_v60, -inf }
 0x253   :  { %1278 = vmax.xlane.f32.xlu0 %v1277_v59 }
 0x257   :  { %1281 = vmax.xlane.f32.xlu0 %v1280_v61 }
 0x2e0   :  { %v1279_v62 = vpop.xlane.xlu0 %1278 }
 0x2e1   :  { %v1283_v63 = vsub.f32 %v1274_v58, %v1279_v62 }
 0x2e3   :  { %v1285_v0 = vmul.f32 1.442695, %v1283_v63  ;;  %v4389_v63 = vld [vmem:[%s4619_s2] sm:$0x3] }
 0x2e4   :  { %v1282_v1 = vpop.xlane.xlu0 %1281 }
 0x2e5   :  { %3389 = vpow2.f32 %v1285_v0  ;;  %v1284_v2 = vsub.f32 %v1275_v60, %v1282_v1  ;;  %v4396_v0 = vld [vmem:[%s4620_s3] sm:$0xff] }
 0x2e6   :  { %vm1960_vm13 = vcmp.gt.f32.partialorder %v4396_v0, 0.0 }
 0x2e7   :  { %v1287_v3 = vmul.f32 1.442695, %v1284_v2  ;;  %v4403_v2 = vld [vmem:[%s4620_s3 + $0x8] sm:$0xff] }
 0x2e8   :  { %vm1961_vm14 = vcmp.gt.f32.partialorder %v4403_v2, 0.0 }
 0x2e9   :  { %3391 = vpow2.f32 %v1287_v3 }
 0x2ef   :  { %v3390_v4 = vpop.eup %3389 }
 0x2f0   :  { %v1289_v5 = vsel %vm1276_vm6, %v3390_v4, 0.0 }
 0x2f1   :  { %1290 = vadd.xlane.f32.xlu0 %v1289_v5 }
 0x2f3   :  { %v3392_v6 = vpop.eup %3391 }
 0x2f4   :  { %v1292_v7 = vsel %vm1276_vm6, %v3392_v6, 0.0 }
 0x2f5   :  { %1293 = vadd.xlane.f32.xlu0 %v1292_v7 }
 0x37e   :  { %v1291_v8 = vpop.xlane.xlu0 %1290 }
 0x37f   :  { %3393 = vrcp.f32 %v1291_v8 }
 0x382   :  { %v1294_v9 = vpop.xlane.xlu0 %1293 }
 0x383   :  { %3395 = vrcp.f32 %v1294_v9 }
 0x389   :  { %v3394_v10 = vpop.eup %3393 }
 0x38a   :  { %v1297_v12 = vmul.f32 %v3394_v10, %v3390_v4 }
 0x38d   :  { %v3396_v11 = vpop.eup %3395 }
 0x38e   :  { %v1298_v13 = vmul.f32 %v3396_v11, %v3392_v6 }
 0x390   :  { %v1299_v15 = vpack.c.bf16 %v1298_v13, %v1297_v12  ;;  %v1695_v13 = vld [vmem:[%s4623_s6] sm:$0xff] }
 0x392   :  { %3320 = vmatmul.mubr.msk.bf16.vlgmr.msra.gmra.mrb[0].mxu0 %vm1276_vm6, %v1299_v15  ;;  %v1696_v15 = vld [vmem:[%s4623_s6 + $0x8] sm:$0xff] }
 0x393   :  { %3351 = vmatprep.mubr.msk.bf16.mxu0 %vm3447_vm8, %v3446_v16 }
 0x465   :  { %v1342_v24 = vpop.f32.mrb[0].mxu0 }
 0x466   :  { %v1343_v25 = vadd.f32 %v1342_v24, %v1304_v23  ;;  %v3321_v26 = vpop.f32.mrb[1].mxu0  ;;  %v1697_v24 = vld [vmem:[%s4623_s6 + $0x10] sm:$0xff] }
 0x467   :  { %v1345_v27 = vpop.f32.mrb[2].mxu0 }
 0x468   :  { %3397 = vtanh.f32 %v1343_v25  ;;  %v1346_v28 = vadd.f32 %v1345_v27, %v1304_v23  ;;  %v3322_v29 = vpop.f32.mrb[3].mxu0  ;;  %v1700_v23 = vpack.c.bf16 %v1696_v15, %v1695_v13  ;;  %v1698_v25 = vld [vmem:[%s4623_s6 + $0x18] sm:$0xff]  ;;  %s3451_s6 = smov 32  }
 0x469   :  { %v1701_v26 = vpack.c.bf16 %v1698_v25, %v1697_v24 }
 0x46a   :  { %3399 = vtanh.f32 %v1346_v28  ;;  %3348 = vmatpush3.bf16.msra.mxu0 %v1700_v23 }
 0x46b   :  { %3349 = vmatprep.subr.bf16.mxu0 %v3446_v16 }
 0x46e   :  { %3350 = vmatpush3.bf16.msra.mxu0 %v1701_v26  ;;  %v1962_v26 = vsel %vm1960_vm13, 0.0, %v3449_v57 }
 0x472   :  { %v3398_v30 = vpop.eup %3397 }
 0x473   :  { %v1351_v32 = vsel %vm1203_vm0, %v3398_v30, 0.0 }
 0x474   :  { %v3400_v31 = vpop.eup %3399 }
 0x475   :  { %v1352_v33 = vsel %vm1203_vm0, %v3400_v31, 0.0 }
 0x476   :  { %v1353_v34 = vadd.f32 %v1352_v33, %v1351_v32 }
 0x478   :  { %v1354_v35 = vrot.slane %v1353_v34, 4 }
 0x47a   :  { %v1355_v36 = vadd.f32 %v1354_v35, %v1353_v34 }
 0x47c   :  { %v1356_v37 = vrot.slane %v1355_v36, 2 }
 0x47e   :  { %v1357_v38 = vadd.f32 %v1356_v37, %v1355_v36  ;;  %v4438_v36 = vsub.s32 3, %v4319_v18 }
 0x480   :  { %v1358_v39 = vrot.slane %v1357_v38, 1  ;;  %v1749_v37 = vrot.slane %v4330_v21, %v4438_v36 }
 0x482   :  { %v1359_v40 = vadd.f32 %v1358_v39, %v1357_v38  ;;  %v4443_v38 = vsub.s32 4, %v4319_v18 }
 0x484   :  { %v1361_v41 = vmul.f32 0.0625, %v1359_v40 }
 0x486   :  { %v1362_v42 = vsub.f32 %v3398_v30, %v1361_v41  ;;  %v1363_v43 = vsub.f32 %v3400_v31, %v1361_v41 }
 0x488   :  { %v1364_v44 = vmul.f32 %v1362_v42, %v1362_v42  ;;  %v1365_v45 = vmul.f32 %v1363_v43, %v1363_v43 }
 0x48a   :  { %v1366_v46 = vsel %vm1203_vm0, %v1364_v44, 0.0  ;;  %v1367_v47 = vsel %vm1203_vm0, %v1365_v45, 0.0 }
 0x48b   :  { %v1368_v48 = vadd.f32 %v1367_v47, %v1366_v46  ;;  %v1761_v47 = vrot.slane %v4330_v21, %v4443_v38 }
 0x48d   :  { %v1369_v49 = vrot.slane %v1368_v48, 4 }
 0x48f   :  { %v1370_v50 = vadd.f32 %v1369_v49, %v1368_v48 }
 0x491   :  { %v1371_v51 = vrot.slane %v1370_v50, 2 }
 0x493   :  { %v1372_v53 = vadd.f32 %v1371_v51, %v1370_v50 }
 0x495   :  { %v1373_v54 = vrot.slane %v1372_v53, 1 }
 0x497   :  { %v1374_v55 = vadd.f32 %v1373_v54, %v1372_v53 }
 0x499   :  { %v1375_v56 = vmul.f32 0.0625, %v1374_v55 }
 0x49b   :  { %v1376_v58 = vadd.f32 1e-05, %v1375_v56 }
 0x49d   :  { %3401 = vrsqrt.f32 %v1376_v58 }
 0x4a7   :  { %v3402_v59 = vpop.eup %3401 }
 0x4a8   :  { %v1378_v60 = vmul.f32 %v3402_v59, %v1362_v42  ;;  %v1379_v61 = vmul.f32 %v3402_v59, %v1363_v43 }
 0x4aa   :  { %v3369_v62 = vpack.c.bf16 %v1379_v61, %v1378_v60 }
 0x4ac   :  { %3370 = vmatpush3.bf16.msra.mxu1 %v3369_v62 }
 0x4af   :  { %3328 = vmatmul.mubr.msk.f32.vlgmr.msra.gmra.mrb[0].mxu1 %vm1276_vm6, %v4389_v63 }
 0x4b0   :  { %3332 = vmatprep.mubr.msk.f32.mxu1 %vm1453_vm9, %v4396_v0 }
 0x582   :  { %v1449_v1 = vpop.f32.mrb[0].mxu1 }
 0x583   :  { %v3329_v3 = vpop.f32.mrb[1].mxu1  ;;  %3330 = vmatprep.subr.msk.mxu1 %vm1460_vm10, %v1449_v1 }
 0x584   :  { %3331 = vmatpush3.msk.msra.mxu1 %vm1460_vm10, %v1449_v1 }
 0x585   :  { %3333 = vmatmul.mubr.msk.f32.vlgmr.msra.gmra.mrb[2].mxu1 %vm1453_vm9, %v4403_v2  ;;  %3371 = vmatprep.subr.bf16.mxu1 %v3448_v17 }
 0x586   :  { %3339 = vmatprep.mubr.msk.f32.mxu1 %vm3447_vm8, %v3446_v16 }
 0x658   :  { %v3334_v4 = vpop.f32.mrb[2].mxu1 }
 0x659   :  { %v1540_v5 = vsub.f32 %v1379_v61, %v3334_v4  ;;  %v1530_v6 = vpop.f32.mrb[3].mxu1 }
 0x65a   :  { %v1539_v7 = vsub.f32 %v1378_v60, %v1530_v6 }
 0x65b   :  { %v1542_v8 = vmul.f32 %v1540_v5, %v1540_v5 }
 0x65c   :  { %v1541_v9 = vmul.f32 %v1539_v7, %v1539_v7 }
 0x65e   :  { %v3372_v10 = vpack.c.bf16 %v1542_v8, %v1541_v9 }
 0x660   :  { %3373 = vmatpush3.bf16.msra.mxu1 %v3372_v10 }
 0x663   :  { %3340 = vmatmul.mubr.msk.f32.vlgmr.msra.gmra.mrb[4].mxu1 %vm1276_vm6, %v4389_v63 }
 0x664   :  { %3344 = vmatprep.mubr.msk.f32.mxu1 %vm1453_vm9, %v4396_v0 }
 0x736   :  { %v1609_v11 = vpop.f32.mrb[4].mxu1 }
 0x737   :  { %v3341_v12 = vpop.f32.mrb[5].mxu1  ;;  %3342 = vmatprep.subr.msk.mxu1 %vm1460_vm10, %v1609_v11 }
 0x738   :  { %3343 = vmatpush3.msk.msra.mxu1 %vm1460_vm10, %v1609_v11 }
 0x739   :  { %3345 = vmatmul.mubr.msk.f32.vlgmr.msra.gmra.mrb[6].mxu1 %vm1453_vm9, %v4403_v2  ;;  %3355 = vmatprep.subr.bf16.mxu1 %v3446_v16  ;;  %v4467_v2 = vsub.s32 5, %v4319_v18 }
 0x73a   :  { %3357 = vmatprep.mubr.msk.bf16.mxu1 %vm3447_vm8, %v3446_v16 }
 0x80c   :  { %v3346_v27 = vpop.f32.mrb[6].mxu1 }
 0x80d   :  { %v1688_v28 = vadd.f32 1e-05, %v3346_v27  ;;  %v1682_v29 = vpop.f32.mrb[7].mxu1  ;;  %v1963_v27 = vsel %vm1961_vm14, 0.0, %v3449_v57 }
 0x80e   :  { %v1683_v30 = vadd.f32 1e-05, %v1682_v29 }
 0x80f   :  { %3403 = vrsqrt.f32 %v1688_v28  ;;  %v3450_v28 = vmov 1  }
 0x810   :  { %3405 = vrsqrt.f32 %v1683_v30 }
 0x819   :  { %v3404_v31 = vpop.eup %3403 }
 0x81a   :  { %v3406_v32 = vpop.eup %3405  ;;  %v1694_v33 = vmul.f32 %v3404_v31, %v1540_v5 }
 0x81b   :  { %v1693_v34 = vmul.f32 %v3406_v32, %v1539_v7 }
 0x81d   :  { %v1699_v35 = vpack.c.bf16 %v1694_v33, %v1693_v34 }
 0x81f   :  { %3352 = vmatmul.mubr.msk.bf16.vlgmr.msra.gmra.mrb[4].mxu0 %vm1203_vm0, %v1699_v35  ;;  %v1843_v35 = vrot.slane %v4330_v21, %v4467_v2 }
 0x8f2   :  { %v1739_v39 = vpop.f32.mrb[4].mxu0 }
 0x8f3   :  { %v3353_v40 = vpop.f32.mrb[5].mxu0  ;;  %v1750_v41 = vmul.f32 %v1749_v37, %v1739_v39  ;;  %v1762_v49 = vmul.f32 %v1761_v47, %v1739_v39 }
 0x8f4   :  { %v1742_v42 = vpop.f32.mrb[6].mxu0 }
 0x8f5   :  { %v1839_v43 = vpack.c.bf16 %v1742_v42, %v1739_v39  ;;  %v3354_v44 = vpop.f32.mrb[7].mxu0  ;;  %v1752_v45 = vsel %vm1203_vm0, %v1750_v41, 0.0  ;;  %v1751_v46 = vmul.f32 %v1749_v37, %v1742_v42  ;;  %v1764_v50 = vsel %vm1203_vm0, %v1762_v49, 0.0 }
 0x8f6   :  { %1753 = vadd.xlane.f32.xlu0 %v1752_v45  ;;  %v1763_v51 = vmul.f32 %v1761_v47, %v1742_v42 }
 0x8f7   :  { %3356 = vmatpush3.bf16.msra.mxu1 %v1839_v43  ;;  %v1755_v48 = vsel %vm1203_vm0, %v1751_v46, 0.0 }
 0x8f8   :  { %3374 = vmatprep.subr.bf16.mxu1 %v3448_v17  ;;  %v1767_v53 = vsel %vm1203_vm0, %v1763_v51, 0.0 }
 0x8fa   :  { %1756 = vadd.xlane.f32.xlu0 %v1755_v48 }
 0x8fe   :  { %1765 = vadd.xlane.f32.xlu0 %v1764_v50 }
 0x902   :  { %1768 = vadd.xlane.f32.xlu0 %v1767_v53 }
 0x983   :  { %v1754_v54 = vpop.xlane.xlu0 %1753 }
 0x984   :  { %1770 = vxpose.xlu1.b32.start [1/2] (short) (narrow) %v1754_v54, 8 }
 0x987   :  { %v1757_v55 = vpop.xlane.xlu0 %1756 }
 0x988   :  { %1771 = vxpose.xlu1.b32.end [2/2] (short) (narrow) %v1757_v55, 8 }
 0x98b   :  { %v1766_v56 = vpop.xlane.xlu0 %1765 }
 0x98f   :  { %v1769_v17 = vpop.xlane.xlu0 %1768 }
 0x9a6   :  { %3388 = vset.pattern.permute.xlu1 %v3450_v28 }
 0xa04   :  { %v1786_v58 = vpop.trf.xlu1 }
 0xa05   :  { %v1805_v59 = vrot.slane %v1786_v58, %v4325_v20 }
 0xa07   :  { %v1806_v60 = vadd.f32 %v1805_v59, %v1766_v56  ;;  %v1807_v61 = vadd.f32 %v1805_v59, %v1769_v17 }
 0xa09   :  { %vm1808_vm11 = vcmp.gt.f32.partialorder %v1806_v60, 0.0  ;;  %v1810_v62 = vmul.f32 0.2, %v1806_v60  ;;  %vm1809_vm12 = vcmp.gt.f32.partialorder %v1807_v61, 0.0  ;;  %v1811_v1 = vmul.f32 0.2, %v1807_v61 }
 0xa0b   :  { %v1812_v3 = vsel %vm1808_vm11, %v1806_v60, %v1810_v62  ;;  %v1813_v4 = vsel %vm1809_vm12, %v1807_v61, %v1811_v1 }
 0xa0c   :  { %v1814_v5 = vsel %vm4353_vm3, %v1812_v3, -1e+30  ;;  %v1815_v7 = vsel %vm4357_vm7, %v1813_v4, -1e+30 }
 0xa0d   :  { %v1816_v6 = vsel %vm1276_vm6, %v1814_v5, -inf  ;;  %v1819_v8 = vsel %vm1276_vm6, %v1815_v7, -inf }
 0xa0e   :  { %1817 = vmax.xlane.f32.xlu0 %v1816_v6 }
 0xa12   :  { %1820 = vmax.xlane.f32.xlu0 %v1819_v8 }
 0xa9b   :  { %v1818_v9 = vpop.xlane.xlu0 %1817 }
 0xa9c   :  { %v1822_v10 = vsub.f32 %v1814_v5, %v1818_v9 }
 0xa9e   :  { %v1824_v11 = vmul.f32 1.442695, %v1822_v10 }
 0xa9f   :  { %v1821_v12 = vpop.xlane.xlu0 %1820 }
 0xaa0   :  { %3407 = vpow2.f32 %v1824_v11  ;;  %v1823_v13 = vsub.f32 %v1815_v7, %v1821_v12 }
 0xaa2   :  { %v1826_v15 = vmul.f32 1.442695, %v1823_v13 }
 0xaa4   :  { %3409 = vpow2.f32 %v1826_v15 }
 0xaaa   :  { %v3408_v23 = vpop.eup %3407 }
 0xaab   :  { %v1828_v52 = vsel %vm1276_vm6, %v3408_v23, 0.0 }
 0xaac   :  { %1829 = vadd.xlane.f32.xlu1 %v1828_v52 }
 0xaae   :  { %v3410_v24 = vpop.eup %3409 }
 0xaaf   :  { %v1831_v25 = vsel %vm1276_vm6, %v3410_v24, 0.0 }
 0xab0   :  { %1832 = vadd.xlane.f32.xlu0 %v1831_v25 }
 0xabd   :  { %1990 = vperm.xlu1 %3388, %v1963_v27  }
 0xac6   :  { %1966 = vperm.xlu0 %3386, %v1962_v26  }
 0xaca   :  { %1971 = vperm.xlu0 %3386, %v1963_v27  }
 0xace   :  { %3387 = vset.pattern.permute.xlu0 %v3450_v28 }
 0xacf   :  { %1986 = vperm.xlu0 %3387, %v1962_v26  }
 0xb39   :  { %v1830_v29 = vpop.xlane.xlu1 %1829 }
 0xb3a   :  { %3411 = vrcp.f32 %v1830_v29 }
 0xb3d   :  { %v1833_v30 = vpop.xlane.xlu0 %1832  ;;  %v1991_v48 = vpop.permute.xlu1 %1990 }
 0xb3e   :  { %3413 = vrcp.f32 %v1833_v30 }
 0xb44   :  { %v3412_v31 = vpop.eup %3411 }
 0xb45   :  { %v1836_v33 = vmul.f32 %v3412_v31, %v3408_v23  ;;  %v1967_v39 = vpop.permute.xlu0 %1966 }
 0xb48   :  { %v3414_v32 = vpop.eup %3413 }
 0xb49   :  { %v1837_v0 = vmul.f32 %v3414_v32, %v3410_v24  ;;  %v1972_v45 = vpop.permute.xlu0 %1971 }
 0xb4b   :  { %v1838_v34 = vpack.c.bf16 %v1837_v0, %v1836_v33 }
 0xb4d   :  { %3358 = vmatmul.mubr.msk.bf16.vlgmr.msra.gmra.mrb[8].mxu1 %vm1276_vm6, %v1838_v34 }
 0xb4e   :  { %3365 = vmatprep.mubr.msk.f32.mxu1 %vm3447_vm8, %v3446_v16  ;;  %v1987_v46 = vpop.permute.xlu0 %1986 }
 0xc20   :  { %v1881_v37 = vpop.f32.mrb[8].mxu1 }
 0xc21   :  { %v1882_v40 = vadd.f32 %v1881_v37, %v1843_v35  ;;  %v3359_v41 = vpop.f32.mrb[9].mxu1 }
 0xc22   :  { %v1884_v42 = vpop.f32.mrb[10].mxu1 }
 0xc23   :  { %3415 = vtanh.f32 %v1882_v40  ;;  %v1885_v43 = vadd.f32 %v1884_v42, %v1843_v35  ;;  %v3360_v44 = vpop.f32.mrb[11].mxu1 }
 0xc25   :  { %3417 = vtanh.f32 %v1885_v43 }
 0xc2d   :  { %v3416_v47 = vpop.eup %3415 }
 0xc2e   :  { %v1993_v16 = vadd.f32 %v3416_v47, %v1987_v46  ;;  %v1974_v49 = vadd.f32 %v3416_v47, %v1967_v39 }
 0xc2f   :  { %v3418_v50 = vpop.eup %3417 }
 0xc30   :  { %v1994_v51 = vadd.f32 %v3418_v50, %v1991_v48  ;;  %v3375_v53 = vpack.c.bf16 %v3418_v50, %v3416_v47  ;;  %v1975_v54 = vadd.f32 %v3418_v50, %v1972_v45  ;;  %v1995_v21 = vsel %vm1203_vm0, %v1993_v16, -inf }
 0xc31   :  { %v1976_v56 = vsel %vm1203_vm0, %v1974_v49, -inf }
 0xc32   :  { %v1996_v55 = vsel %vm1203_vm0, %v1994_v51, -inf  ;;  %3376 = vmatpush3.bf16.msra.mxu1 %v3375_v53  ;;  %v1977_v58 = vsel %vm1203_vm0, %v1975_v54, -inf }
 0xc33   :  { %v1997_v59 = vmax.f32 %v1995_v21, %v1996_v55  ;;  %v1978_v17 = vmax.f32 %v1976_v56, %v1977_v58 }
 0xc35   :  { %v1998_v60 = vrot.slane %v1997_v59, 4  ;;  %3366 = vmatmul.mubr.msk.f32.vlgmr.msra.gmra.mrb[12].mxu1 %vm1276_vm6, %v4389_v63  ;;  %v1979_v61 = vrot.slane %v1978_v17, 4 }
 0xc37   :  { %v1999_v62 = vmax.f32 %v1997_v59, %v1998_v60  ;;  %v1980_v1 = vmax.f32 %v1978_v17, %v1979_v61 }
 0xc39   :  { %v2000_v3 = vrot.slane %v1999_v62, 2  ;;  %v1981_v4 = vrot.slane %v1980_v1, 2 }
 0xc3b   :  { %v2001_v5 = vmax.f32 %v1999_v62, %v2000_v3  ;;  %v1982_v6 = vmax.f32 %v1980_v1, %v1981_v4 }
 0xc3d   :  { %v2002_v7 = vrot.slane %v2001_v5, 1  ;;  %v1983_v8 = vrot.slane %v1982_v6, 1 }
 0xc3f   :  { %v1984_v9 = vmax.f32 %v1982_v6, %v1983_v8  ;;  %v2003_v10 = vmax.f32 %v2001_v5, %v2002_v7 }
 0xc41   :  { %v2005_v11 = vsel %vm2004_vm15, %v1984_v9, %v2003_v10 }
 0xd08   :  { %v1956_v12 = vpop.f32.mrb[12].mxu1 }
 0xd09   :  { %2007 = vrot.lane.b32.xlu0 %v1956_v12, %s3451_s6  ;;  %v3367_v13 = vpop.f32.mrb[13].mxu1 }
 0xd7b   :  { %v2008_v15 = vpop.permute.xlu0 %2007 }
 0xd7c   :  { %v2010_v63 = vsel %vm1203_vm0, %v2005_v11, %v2008_v15 }
 0xd7d   :  { %3441 = dma.done.wait [#allocation3], 17408 }
 0xd7e   :  { %3442 = vsyncadd [#allocation3], 4294949888  ;;  %2368 = vmatprep.mubr.bf16.mxu0 %v3445_v14  ;;  %2409 = vmatprep.mubr.bf16.mxu1 %v3445_v14  ;;  %v2017_v23 = vld [vmem:[#allocation2 + $0x8] sm:$0xff]  ;;  %v2019_v52 = vld [vmem:[#allocation2 + $0x18] sm:$0xff]  ;;  %v4480_v40 = vpack.c.bf16 %v2010_v63, %v2010_v63  ;;  %vm2332_vm0 = vcmask 523264   ;;  %s3453_s4 = smov [#allocation4]  }
 0xd7f   :  { %v2016_v24 = vld [vmem:[#allocation2] sm:$0xff]  ;;  %2336 = vmatprep.subr.bf16.mxu0 %v2017_v23  ;;  %2377 = vmatprep.subr.bf16.mxu1 %v2019_v52  ;;  %v2018_v25 = vld [vmem:[#allocation2 + $0x10] sm:$0xff]  ;;  %v2051_v57 = vld [vmem:[#allocation2 + $0x118] sm:$0xff]  ;;  %s3235_s5 = sshll.u32 %s3453_s4, 4  ;;  %s3236_s5 = int_to_ptr.vmem [resolvable:$true] %s3235_s5 }
 0xd80   :  { %v2053_v26 = vld [vmem:[#allocation2 + $0x128] sm:$0xff]  ;;  %2337 = vmatpush1.bf16.msra.mxu0 %v2016_v24  ;;  %2378 = vmatpush1.bf16.msra.mxu1 %v2018_v25  ;;  %v2050_v27 = vld [vmem:[#allocation2 + $0x110] sm:$0xff]  ;;  %v2052_v28 = vld [vmem:[#allocation2 + $0x120] sm:$0xff]  ;;  %s3419_s28 = scalar_lea.vmem %s3236_s5, 1088  ;;  %p3424_p1 = scmp.lt.s32.totalorder %s3236_s5, %s3236_s5 }
 0xd81   :  { %2338 = vmatprep.subr.bf16.mxu0 %v2051_v57  ;;  %2379 = vmatprep.subr.bf16.mxu1 %v2053_v26  ;;  %v2085_v29 = vld [vmem:[#allocation2 + $0x228] sm:$0xff]  ;;  %v2087_v30 = vld [vmem:[#allocation2 + $0x238] sm:$0xff]  ;;  %v2084_v31 = vld [vmem:[#allocation2 + $0x220] sm:$0xff]  ;;  %p3420_p0 = scmp.ne.s32.totalorder %s3236_s5, %s3419_s28  ;;  %p3425_p2 = scmp.lt.s32.totalorder %s3419_s28, %s3419_s28 }
 0xd82   :  { %v2086_v32 = vld [vmem:[#allocation2 + $0x230] sm:$0xff]  ;;  %v2119_v33 = vld [vmem:[#allocation2 + $0x338] sm:$0xff]  ;;  %v2121_v0 = vld [vmem:[#allocation2 + $0x348] sm:$0xff] }
 0xd83   :  { %v2118_v34 = vld [vmem:[#allocation2 + $0x330] sm:$0xff]  ;;  %v2120_v35 = vld [vmem:[#allocation2 + $0x340] sm:$0xff]  ;;  %v2021_v37 = vld [vmem:[#allocation2 + $0x28] sm:$0xff]  ;;  %p3426_p3 = por %p3425_p2, %p3424_p1 }
 0xd84   :  { %2339 = vmatpush1.bf16.msra.mxu0 %v2050_v27  ;;  %2380 = vmatpush1.bf16.msra.mxu1 %v2052_v28  ;;  %v2023_v39 = vld [vmem:[#allocation2 + $0x38] sm:$0xff]  ;;  %v2020_v41 = vld [vmem:[#allocation2 + $0x20] sm:$0xff]  ;;  %v2022_v42 = vld [vmem:[#allocation2 + $0x30] sm:$0xff] }
 0xd85   :  { %2340 = vmatprep.subr.bf16.mxu0 %v2085_v29  ;;  %2381 = vmatprep.subr.bf16.mxu1 %v2087_v30  ;;  %v2055_v43 = vld [vmem:[#allocation2 + $0x138] sm:$0xff]  ;;  %v2057_v44 = vld [vmem:[#allocation2 + $0x148] sm:$0xff]  ;;  %v2054_v45 = vld [vmem:[#allocation2 + $0x130] sm:$0xff]  ;;  %p3427_p4 = pnand %p3426_p3, %p3420_p0 }
 0xd86   :  { %v2056_v46 = vld [vmem:[#allocation2 + $0x140] sm:$0xff]  ;;  %v2089_v47 = vld [vmem:[#allocation2 + $0x248] sm:$0xff]  ;;  %v2091_v48 = vld [vmem:[#allocation2 + $0x258] sm:$0xff] }
 0xd87   :  { %v2088_v16 = vld [vmem:[#allocation2 + $0x240] sm:$0xff]  ;;  %v2090_v49 = vld [vmem:[#allocation2 + $0x250] sm:$0xff]  ;;  %v2123_v50 = vld [vmem:[#allocation2 + $0x358] sm:$0xff] }
 0xd88   :  { %2341 = vmatpush1.bf16.msra.mxu0 %v2084_v31  ;;  %2382 = vmatpush1.bf16.msra.mxu1 %v2086_v32  ;;  %v2125_v51 = vld [vmem:[#allocation2 + $0x368] sm:$0xff]  ;;  %v2122_v53 = vld [vmem:[#allocation2 + $0x350] sm:$0xff]  ;;  %v2124_v54 = vld [vmem:[#allocation2 + $0x360] sm:$0xff] }
 0xd89   :  { %2342 = vmatprep.subr.bf16.mxu0 %v2119_v33  ;;  %2383 = vmatprep.subr.bf16.mxu1 %v2121_v0  ;;  %v2025_v21 = vld [vmem:[#allocation2 + $0x48] sm:$0xff]  ;;  %v2027_v55 = vld [vmem:[#allocation2 + $0x58] sm:$0xff]  ;;  %v2024_v56 = vld [vmem:[#allocation2 + $0x40] sm:$0xff] }
 0xd8a   :  { %v2026_v58 = vld [vmem:[#allocation2 + $0x50] sm:$0xff]  ;;  %v2059_v59 = vld [vmem:[#allocation2 + $0x158] sm:$0xff]  ;;  %v2061_v17 = vld [vmem:[#allocation2 + $0x168] sm:$0xff] }
 0xd8b   :  { %v2058_v60 = vld [vmem:[#allocation2 + $0x150] sm:$0xff]  ;;  %v2060_v61 = vld [vmem:[#allocation2 + $0x160] sm:$0xff]  ;;  %v2093_v62 = vld [vmem:[#allocation2 + $0x268] sm:$0xff] }
 0xd8c   :  { %2343 = vmatpush1.bf16.msra.mxu0 %v2118_v34  ;;  %2384 = vmatpush1.bf16.msra.mxu1 %v2120_v35  ;;  %v2095_v1 = vld [vmem:[#allocation2 + $0x278] sm:$0xff]  ;;  %v2092_v3 = vld [vmem:[#allocation2 + $0x260] sm:$0xff]  ;;  %v2094_v4 = vld [vmem:[#allocation2 + $0x270] sm:$0xff] }
 0xd8d   :  { %2418 = vmatprep.subr.bf16.mxu0 %v2021_v37  ;;  %2459 = vmatprep.subr.bf16.mxu1 %v2023_v39  ;;  %v2127_v5 = vld [vmem:[#allocation2 + $0x378] sm:$0xff]  ;;  %v2129_v6 = vld [vmem:[#allocation2 + $0x388] sm:$0xff]  ;;  %v2126_v7 = vld [vmem:[#allocation2 + $0x370] sm:$0xff] }
 0xd8e   :  { %v2128_v8 = vld [vmem:[#allocation2 + $0x380] sm:$0xff]  ;;  %v2029_v9 = vld [vmem:[#allocation2 + $0x68] sm:$0xff]  ;;  %v2031_v10 = vld [vmem:[#allocation2 + $0x78] sm:$0xff] }
 0xd8f   :  { %3276 = vmatmul.mubr.msk.bf16.vlgmr.msra.gmra.mrb[8].mxu0 %vm2332_vm0, %v4480_v40  ;;  %3277 = vmatmul.mubr.msk.bf16.vlgmr.msra.gmra.mrb[16].mxu1 %vm2332_vm0, %v4480_v40  ;;  %v2028_v11 = vld [vmem:[#allocation2 + $0x60] sm:$0xff]  ;;  %v2030_v12 = vld [vmem:[#allocation2 + $0x70] sm:$0xff]  ;;  %v2063_v13 = vld [vmem:[#allocation2 + $0x178] sm:$0xff] }
 0xd90   :  { %2419 = vmatpush1.bf16.msra.mxu0 %v2020_v41  ;;  %2460 = vmatpush1.bf16.msra.mxu1 %v2022_v42  ;;  %v2065_v15 = vld [vmem:[#allocation2 + $0x188] sm:$0xff]  ;;  %v2062_v63 = vld [vmem:[#allocation2 + $0x170] sm:$0xff]  ;;  %v2064_v23 = vld [vmem:[#allocation2 + $0x180] sm:$0xff] }
 0xd91   :  { %2420 = vmatprep.subr.bf16.mxu0 %v2055_v43  ;;  %2461 = vmatprep.subr.bf16.mxu1 %v2057_v44  ;;  %v2097_v52 = vld [vmem:[#allocation2 + $0x288] sm:$0xff]  ;;  %v2099_v24 = vld [vmem:[#allocation2 + $0x298] sm:$0xff]  ;;  %v2096_v25 = vld [vmem:[#allocation2 + $0x280] sm:$0xff] }
 0xd92   :  { %2450 = vmatprep.mubr.bf16.mxu0 %v3445_v14  ;;  %2491 = vmatprep.mubr.bf16.mxu1 %v3445_v14  ;;  %v2098_v57 = vld [vmem:[#allocation2 + $0x290] sm:$0xff]  ;;  %v2131_v26 = vld [vmem:[#allocation2 + $0x398] sm:$0xff]  ;;  %v2133_v27 = vld [vmem:[#allocation2 + $0x3a8] sm:$0xff] }
 0xd93   :  { %v2130_v28 = vld [vmem:[#allocation2 + $0x390] sm:$0xff]  ;;  %v2132_v29 = vld [vmem:[#allocation2 + $0x3a0] sm:$0xff]  ;;  %v2033_v30 = vld [vmem:[#allocation2 + $0x88] sm:$0xff] }
 0xd94   :  { %2421 = vmatpush1.bf16.msra.mxu0 %v2054_v45  ;;  %2462 = vmatpush1.bf16.msra.mxu1 %v2056_v46  ;;  %v2035_v31 = vld [vmem:[#allocation2 + $0x98] sm:$0xff]  ;;  %v2032_v32 = vld [vmem:[#allocation2 + $0x80] sm:$0xff]  ;;  %v2034_v33 = vld [vmem:[#allocation2 + $0x90] sm:$0xff] }
 0xd95   :  { %2422 = vmatprep.subr.bf16.mxu0 %v2089_v47  ;;  %2463 = vmatprep.subr.bf16.mxu1 %v2091_v48  ;;  %v2067_v0 = vld [vmem:[#allocation2 + $0x198] sm:$0xff]  ;;  %v2069_v34 = vld [vmem:[#allocation2 + $0x1a8] sm:$0xff]  ;;  %v2066_v35 = vld [vmem:[#allocation2 + $0x190] sm:$0xff] }
 0xd96   :  { %v2068_v37 = vld [vmem:[#allocation2 + $0x1a0] sm:$0xff]  ;;  %v2101_v39 = vld [vmem:[#allocation2 + $0x2a8] sm:$0xff]  ;;  %v2103_v41 = vld [vmem:[#allocation2 + $0x2b8] sm:$0xff] }
 0xd97   :  { %v2100_v42 = vld [vmem:[#allocation2 + $0x2a0] sm:$0xff]  ;;  %v2102_v43 = vld [vmem:[#allocation2 + $0x2b0] sm:$0xff]  ;;  %v2135_v44 = vld [vmem:[#allocation2 + $0x3b8] sm:$0xff] }
 0xd98   :  { %2423 = vmatpush1.bf16.msra.mxu0 %v2088_v16  ;;  %2464 = vmatpush1.bf16.msra.mxu1 %v2090_v49  ;;  %v2137_v45 = vld [vmem:[#allocation2 + $0x3c8] sm:$0xff]  ;;  %v2134_v46 = vld [vmem:[#allocation2 + $0x3b0] sm:$0xff]  ;;  %v2136_v47 = vld [vmem:[#allocation2 + $0x3c0] sm:$0xff] }
 0xd99   :  { %2424 = vmatprep.subr.bf16.mxu0 %v2123_v50  ;;  %2465 = vmatprep.subr.bf16.mxu1 %v2125_v51  ;;  %v2037_v48 = vld [vmem:[#allocation2 + $0xa8] sm:$0xff]  ;;  %v2039_v16 = vld [vmem:[#allocation2 + $0xb8] sm:$0xff]  ;;  %v2036_v49 = vld [vmem:[#allocation2 + $0xa0] sm:$0xff] }
 0xd9a   :  { %v2038_v50 = vld [vmem:[#allocation2 + $0xb0] sm:$0xff]  ;;  %v2071_v51 = vld [vmem:[#allocation2 + $0x1b8] sm:$0xff] }
 0xd9c   :  { %2425 = vmatpush1.bf16.msra.mxu0 %v2122_v53  ;;  %2466 = vmatpush1.bf16.msra.mxu1 %v2124_v54  ;;  %v2073_v53 = vld [vmem:[#allocation2 + $0x1c8] sm:$0xff]  ;;  %v2070_v54 = vld [vmem:[#allocation2 + $0x1b0] sm:$0xff] }
 0xd9d   :  { %2500 = vmatprep.subr.bf16.mxu0 %v2025_v21  ;;  %2541 = vmatprep.subr.bf16.mxu1 %v2027_v55  ;;  %v2072_v21 = vld [vmem:[#allocation2 + $0x1c0] sm:$0xff]  ;;  %v2105_v55 = vld [vmem:[#allocation2 + $0x2c8] sm:$0xff] }
 0xd9f   :  { %3278 = vmatmul.mubr.msk.bf16.vlgmr.msra.gmra.mrb[12].mxu0 %vm2332_vm0, %v4480_v40  ;;  %3279 = vmatmul.mubr.msk.bf16.vlgmr.msra.gmra.mrb[20].mxu1 %vm2332_vm0, %v4480_v40 }
 0xda0   :  { %2501 = vmatpush1.bf16.msra.mxu0 %v2024_v56  ;;  %2542 = vmatpush1.bf16.msra.mxu1 %v2026_v58  ;;  %v2107_v56 = vld [vmem:[#allocation2 + $0x2d8] sm:$0xff]  ;;  %v2104_v58 = vld [vmem:[#allocation2 + $0x2c0] sm:$0xff] }
 0xda1   :  { %2502 = vmatprep.subr.bf16.mxu0 %v2059_v59  ;;  %2543 = vmatprep.subr.bf16.mxu1 %v2061_v17  ;;  %v2106_v59 = vld [vmem:[#allocation2 + $0x2d0] sm:$0xff]  ;;  %v2139_v17 = vld [vmem:[#allocation2 + $0x3d8] sm:$0xff] }
 0xda2   :  { %2532 = vmatprep.mubr.bf16.mxu0 %v3445_v14  ;;  %2573 = vmatprep.mubr.bf16.mxu1 %v3445_v14 }
 0xda4   :  { %2503 = vmatpush1.bf16.msra.mxu0 %v2058_v60  ;;  %2544 = vmatpush1.bf16.msra.mxu1 %v2060_v61  ;;  %v2141_v60 = vld [vmem:[#allocation2 + $0x3e8] sm:$0xff]  ;;  %v2138_v61 = vld [vmem:[#allocation2 + $0x3d0] sm:$0xff] }
 0xda5   :  { %2504 = vmatprep.subr.bf16.mxu0 %v2093_v62  ;;  %2545 = vmatprep.subr.bf16.mxu1 %v2095_v1  ;;  %v2140_v62 = vld [vmem:[#allocation2 + $0x3e0] sm:$0xff]  ;;  %v2041_v1 = vld [vmem:[#allocation2 + $0xc8] sm:$0xff] }
 0xda8   :  { %2505 = vmatpush1.bf16.msra.mxu0 %v2092_v3  ;;  %2546 = vmatpush1.bf16.msra.mxu1 %v2094_v4  ;;  %v2043_v3 = vld [vmem:[#allocation2 + $0xd8] sm:$0xff]  ;;  %v2040_v4 = vld [vmem:[#allocation2 + $0xc0] sm:$0xff] }
 0xda9   :  { %2506 = vmatprep.subr.bf16.mxu0 %v2127_v5  ;;  %2547 = vmatprep.subr.bf16.mxu1 %v2129_v6  ;;  %v2042_v5 = vld [vmem:[#allocation2 + $0xd0] sm:$0xff]  ;;  %v2075_v6 = vld [vmem:[#allocation2 + $0x1d8] sm:$0xff] }
 0xdac   :  { %2507 = vmatpush1.bf16.msra.mxu0 %v2126_v7  ;;  %2548 = vmatpush1.bf16.msra.mxu1 %v2128_v8  ;;  %v2077_v7 = vld [vmem:[#allocation2 + $0x1e8] sm:$0xff]  ;;  %v2074_v8 = vld [vmem:[#allocation2 + $0x1d0] sm:$0xff] }
 0xdad   :  { %2582 = vmatprep.subr.bf16.mxu0 %v2029_v9  ;;  %2623 = vmatprep.subr.bf16.mxu1 %v2031_v10  ;;  %v2076_v9 = vld [vmem:[#allocation2 + $0x1e0] sm:$0xff]  ;;  %v2109_v10 = vld [vmem:[#allocation2 + $0x2e8] sm:$0xff] }
 0xdaf   :  { %3280 = vmatmul.mubr.msk.bf16.vlgmr.msra.gmra.mrb[16].mxu0 %vm2332_vm0, %v4480_v40  ;;  %3281 = vmatmul.mubr.msk.bf16.vlgmr.msra.gmra.mrb[24].mxu1 %vm2332_vm0, %v4480_v40 }
 0xdb0   :  { %2583 = vmatpush1.bf16.msra.mxu0 %v2028_v11  ;;  %2624 = vmatpush1.bf16.msra.mxu1 %v2030_v12  ;;  %v2111_v11 = vld [vmem:[#allocation2 + $0x2f8] sm:$0xff]  ;;  %v2108_v12 = vld [vmem:[#allocation2 + $0x2e0] sm:$0xff] }
 0xdb1   :  { %2584 = vmatprep.subr.bf16.mxu0 %v2063_v13  ;;  %2625 = vmatprep.subr.bf16.mxu1 %v2065_v15  ;;  %v2110_v13 = vld [vmem:[#allocation2 + $0x2f0] sm:$0xff]  ;;  %v2143_v15 = vld [vmem:[#allocation2 + $0x3f8] sm:$0xff] }
 0xdb2   :  { %2614 = vmatprep.mubr.bf16.mxu0 %v3445_v14  ;;  %2655 = vmatprep.mubr.bf16.mxu1 %v3445_v14 }
 0xdb4   :  { %2585 = vmatpush1.bf16.msra.mxu0 %v2062_v63  ;;  %2626 = vmatpush1.bf16.msra.mxu1 %v2064_v23  ;;  %v2145_v63 = vld [vmem:[#allocation2 + $0x408] sm:$0xff]  ;;  %v2142_v23 = vld [vmem:[#allocation2 + $0x3f0] sm:$0xff] }
 0xdb5   :  { %2586 = vmatprep.subr.bf16.mxu0 %v2097_v52  ;;  %2627 = vmatprep.subr.bf16.mxu1 %v2099_v24  ;;  %v2144_v52 = vld [vmem:[#allocation2 + $0x400] sm:$0xff]  ;;  %v2045_v24 = vld [vmem:[#allocation2 + $0xe8] sm:$0xff] }
 0xdb8   :  { %2587 = vmatpush1.bf16.msra.mxu0 %v2096_v25  ;;  %2628 = vmatpush1.bf16.msra.mxu1 %v2098_v57  ;;  %v2047_v25 = vld [vmem:[#allocation2 + $0xf8] sm:$0xff]  ;;  %v2044_v57 = vld [vmem:[#allocation2 + $0xe0] sm:$0xff] }
 0xdb9   :  { %2588 = vmatprep.subr.bf16.mxu0 %v2131_v26  ;;  %2629 = vmatprep.subr.bf16.mxu1 %v2133_v27  ;;  %v2046_v26 = vld [vmem:[#allocation2 + $0xf0] sm:$0xff]  ;;  %v2079_v27 = vld [vmem:[#allocation2 + $0x1f8] sm:$0xff] }
 0xdbc   :  { %2589 = vmatpush1.bf16.msra.mxu0 %v2130_v28  ;;  %2630 = vmatpush1.bf16.msra.mxu1 %v2132_v29  ;;  %v2081_v28 = vld [vmem:[#allocation2 + $0x208] sm:$0xff]  ;;  %v2078_v29 = vld [vmem:[#allocation2 + $0x1f0] sm:$0xff] }
 0xdbd   :  { %2664 = vmatprep.subr.bf16.mxu0 %v2033_v30  ;;  %2705 = vmatprep.subr.bf16.mxu1 %v2035_v31  ;;  %v2080_v30 = vld [vmem:[#allocation2 + $0x200] sm:$0xff]  ;;  %v2113_v31 = vld [vmem:[#allocation2 + $0x308] sm:$0xff] }
 0xdbf   :  { %3282 = vmatmul.mubr.msk.bf16.vlgmr.msra.gmra.mrb[20].mxu0 %vm2332_vm0, %v4480_v40  ;;  %3283 = vmatmul.mubr.msk.bf16.vlgmr.msra.gmra.mrb[28].mxu1 %vm2332_vm0, %v4480_v40 }
 0xdc0   :  { %2665 = vmatpush1.bf16.msra.mxu0 %v2032_v32  ;;  %2706 = vmatpush1.bf16.msra.mxu1 %v2034_v33  ;;  %v2115_v32 = vld [vmem:[#allocation2 + $0x318] sm:$0xff]  ;;  %v2112_v33 = vld [vmem:[#allocation2 + $0x300] sm:$0xff] }
 0xdc1   :  { %2666 = vmatprep.subr.bf16.mxu0 %v2067_v0  ;;  %2707 = vmatprep.subr.bf16.mxu1 %v2069_v34  ;;  %v2114_v0 = vld [vmem:[#allocation2 + $0x310] sm:$0xff]  ;;  %v2147_v34 = vld [vmem:[#allocation2 + $0x418] sm:$0xff] }
 0xdc2   :  { %2696 = vmatprep.mubr.bf16.mxu0 %v3445_v14  ;;  %2737 = vmatprep.mubr.bf16.mxu1 %v3445_v14 }
 0xdc4   :  { %2667 = vmatpush1.bf16.msra.mxu0 %v2066_v35  ;;  %2708 = vmatpush1.bf16.msra.mxu1 %v2068_v37  ;;  %v2149_v35 = vld [vmem:[#allocation2 + $0x428] sm:$0xff]  ;;  %v2146_v37 = vld [vmem:[#allocation2 + $0x410] sm:$0xff] }
 0xdc5   :  { %2668 = vmatprep.subr.bf16.mxu0 %v2101_v39  ;;  %2709 = vmatprep.subr.bf16.mxu1 %v2103_v41  ;;  %v2148_v39 = vld [vmem:[#allocation2 + $0x420] sm:$0xff]  ;;  %v2049_v41 = vld [vmem:[#allocation2 + $0x108] sm:$0xff] }
 0xdc8   :  { %2669 = vmatpush1.bf16.msra.mxu0 %v2100_v42  ;;  %2710 = vmatpush1.bf16.msra.mxu1 %v2102_v43  ;;  %v2048_v42 = vld [vmem:[#allocation2 + $0x100] sm:$0xff]  ;;  %v2083_v43 = vld [vmem:[#allocation2 + $0x218] sm:$0xff] }
 0xdc9   :  { %2670 = vmatprep.subr.bf16.mxu0 %v2135_v44  ;;  %2711 = vmatprep.subr.bf16.mxu1 %v2137_v45  ;;  %v2082_v44 = vld [vmem:[#allocation2 + $0x210] sm:$0xff]  ;;  %v2117_v45 = vld [vmem:[#allocation2 + $0x328] sm:$0xff] }
 0xdcc   :  { %2671 = vmatpush1.bf16.msra.mxu0 %v2134_v46  ;;  %2712 = vmatpush1.bf16.msra.mxu1 %v2136_v47  ;;  %v2116_v46 = vld [vmem:[#allocation2 + $0x320] sm:$0xff]  ;;  %v2151_v47 = vld [vmem:[#allocation2 + $0x438] sm:$0xff] }
 0xdcd   :  { %2746 = vmatprep.subr.bf16.mxu0 %v2037_v48  ;;  %2787 = vmatprep.subr.bf16.mxu1 %v2039_v16  ;;  %v2150_v48 = vld [vmem:[#allocation2 + $0x430] sm:$0xff]  ;;  %v2152_v16 = vld [vmem:[%s4625_s8] sm:$0xff] }
 0xdcf   :  { %3284 = vmatmul.mubr.msk.bf16.vlgmr.msra.gmra.mrb[24].mxu0 %vm2332_vm0, %v4480_v40  ;;  %3285 = vmatmul.mubr.msk.bf16.vlgmr.msra.gmra.mrb[32].mxu1 %vm2332_vm0, %v4480_v40 }
 0xdd0   :  { %2747 = vmatpush1.bf16.msra.mxu0 %v2036_v49  ;;  %2788 = vmatpush1.bf16.msra.mxu1 %v2038_v50  ;;  %v3452_v49 = vmov 1983009808   ;;  %v2165_v50 = vrot.slane %v2152_v16, %v4325_v20 }
 0xdd1   :  { %2748 = vmatprep.subr.bf16.mxu0 %v2071_v51  ;;  %2789 = vmatprep.subr.bf16.mxu1 %v2073_v53  ;;  %v2173_v51 = vrot.slane %v2152_v16, %v4378_v22  ;;  %v2169_v53 = vrot.slane %v2152_v16, %v4322_v19 }
 0xdd2   :  { %2778 = vmatprep.mubr.bf16.mxu0 %v3445_v14  ;;  %2819 = vmatprep.mubr.bf16.mxu1 %v3445_v14 }
 0xdd4   :  { %2749 = vmatpush1.bf16.msra.mxu0 %v2070_v54  ;;  %2790 = vmatpush1.bf16.msra.mxu1 %v2072_v21  ;;  %v2177_v21 = vrot.slane %v2152_v16, %v4438_v36 }
 0xdd5   :  { %2750 = vmatprep.subr.bf16.mxu0 %v2105_v55  ;;  %2791 = vmatprep.subr.bf16.mxu1 %v2107_v56 }
 0xdd8   :  { %2751 = vmatpush1.bf16.msra.mxu0 %v2104_v58  ;;  %2792 = vmatpush1.bf16.msra.mxu1 %v2106_v59 }
 0xdd9   :  { %2752 = vmatprep.subr.bf16.mxu0 %v2139_v17  ;;  %2793 = vmatprep.subr.bf16.mxu1 %v2141_v60 }
 0xddc   :  { %2753 = vmatpush1.bf16.msra.mxu0 %v2138_v61  ;;  %2794 = vmatpush1.bf16.msra.mxu1 %v2140_v62 }
 0xddd   :  { %2828 = vmatprep.subr.bf16.mxu0 %v2041_v1  ;;  %2869 = vmatprep.subr.bf16.mxu1 %v2043_v3 }
 0xddf   :  { %3286 = vmatmul.mubr.msk.bf16.vlgmr.msra.gmra.mrb[28].mxu0 %vm2332_vm0, %v4480_v40  ;;  %3287 = vmatmul.mubr.msk.bf16.vlgmr.msra.gmra.mrb[36].mxu1 %vm2332_vm0, %v4480_v40 }
 0xde0   :  { %2829 = vmatpush1.bf16.msra.mxu0 %v2040_v4  ;;  %2870 = vmatpush1.bf16.msra.mxu1 %v2042_v5 }
 0xde1   :  { %2830 = vmatprep.subr.bf16.mxu0 %v2075_v6  ;;  %2871 = vmatprep.subr.bf16.mxu1 %v2077_v7 }
 0xde2   :  { %2860 = vmatprep.mubr.bf16.mxu0 %v3445_v14  ;;  %2901 = vmatprep.mubr.bf16.mxu1 %v3445_v14 }
 0xde4   :  { %2831 = vmatpush1.bf16.msra.mxu0 %v2074_v8  ;;  %2872 = vmatpush1.bf16.msra.mxu1 %v2076_v9 }
 0xde5   :  { %2832 = vmatprep.subr.bf16.mxu0 %v2109_v10  ;;  %2873 = vmatprep.subr.bf16.mxu1 %v2111_v11  ;;  %v4544_v11 = vsub.s32 6, %v4319_v18 }
 0xde8   :  { %2833 = vmatpush1.bf16.msra.mxu0 %v2108_v12  ;;  %2874 = vmatpush1.bf16.msra.mxu1 %v2110_v13  ;;  %v4547_v12 = vsub.s32 7, %v4319_v18  ;;  %v2181_v13 = vrot.slane %v2152_v16, %v4443_v38 }
 0xde9   :  { %2834 = vmatprep.subr.bf16.mxu0 %v2143_v15  ;;  %2875 = vmatprep.subr.bf16.mxu1 %v2145_v63  ;;  %v2189_v15 = vrot.slane %v2152_v16, %v4544_v11  ;;  %v2185_v63 = vrot.slane %v2152_v16, %v4467_v2 }
 0xdec   :  { %2835 = vmatpush1.bf16.msra.mxu0 %v2142_v23  ;;  %2876 = vmatpush1.bf16.msra.mxu1 %v2144_v52  ;;  %v2193_v23 = vrot.slane %v2152_v16, %v4547_v12 }
 0xded   :  { %2910 = vmatprep.subr.bf16.mxu0 %v2045_v24  ;;  %2951 = vmatprep.subr.bf16.mxu1 %v2047_v25 }
 0xdef   :  { %3288 = vmatmul.mubr.msk.bf16.vlgmr.msra.gmra.mrb[32].mxu0 %vm2332_vm0, %v4480_v40  ;;  %3289 = vmatmul.mubr.msk.bf16.vlgmr.msra.gmra.mrb[40].mxu1 %vm2332_vm0, %v4480_v40 }
 0xdf0   :  { %2911 = vmatpush1.bf16.msra.mxu0 %v2044_v57  ;;  %2952 = vmatpush1.bf16.msra.mxu1 %v2046_v26 }
 0xdf1   :  { %2912 = vmatprep.subr.bf16.mxu0 %v2079_v27  ;;  %2953 = vmatprep.subr.bf16.mxu1 %v2081_v28 }
 0xdf2   :  { %2942 = vmatprep.mubr.bf16.mxu0 %v3445_v14  ;;  %2983 = vmatprep.mubr.bf16.mxu1 %v3445_v14 }
 0xdf4   :  { %2913 = vmatpush1.bf16.msra.mxu0 %v2078_v29  ;;  %2954 = vmatpush1.bf16.msra.mxu1 %v2080_v30 }
 0xdf5   :  { %2914 = vmatprep.subr.bf16.mxu0 %v2113_v31  ;;  %2955 = vmatprep.subr.bf16.mxu1 %v2115_v32 }
 0xdf8   :  { %2915 = vmatpush1.bf16.msra.mxu0 %v2112_v33  ;;  %2956 = vmatpush1.bf16.msra.mxu1 %v2114_v0 }
 0xdf9   :  { %2916 = vmatprep.subr.bf16.mxu0 %v2147_v34  ;;  %2957 = vmatprep.subr.bf16.mxu1 %v2149_v35 }
 0xdfc   :  { %2917 = vmatpush1.bf16.msra.mxu0 %v2146_v37  ;;  %2958 = vmatpush1.bf16.msra.mxu1 %v2148_v39  ;;  %v2153_v39 = vld [vmem:[%s4625_s8 + $0x8] sm:$0xff] }
 0xdfd   :  { %2992 = vmatprep.subr.bf16.mxu0 %v2049_v41  ;;  %v2197_v41 = vrot.slane %v2153_v39, %v4325_v20 }
 0xdff   :  { %3290 = vmatmul.mubr.msk.bf16.vlgmr.msra.gmra.mrb[36].mxu0 %vm2332_vm0, %v4480_v40  ;;  %3291 = vmatmul.mubr.msk.bf16.vlgmr.msra.gmra.mrb[44].mxu1 %vm2332_vm0, %v4480_v40 }
 0xe00   :  { %2993 = vmatpush1.bf16.msra.mxu0 %v2048_v42  ;;  %3024 = vmatprep.mubr.bf16.mxu0 %v3445_v14  ;;  %v3070_v14 = vunpack.c.l.s4 %v3452_v49  ;;  %v2205_v42 = vrot.slane %v2153_v39, %v4378_v22 }
 0xe01   :  { %2994 = vmatprep.subr.bf16.mxu0 %v2083_v43  ;;  %v2201_v43 = vrot.slane %v2153_v39, %v4322_v19 }
 0xe02   :  { %v3071_v54 = vunpack.c.0.s8 %v3070_v14 }
 0xe04   :  { %2995 = vmatpush1.bf16.msra.mxu0 %v2082_v44  ;;  %v4539_v61 = vsub.s32 %v3071_v54, %v4319_v18  ;;  %v2209_v44 = vrot.slane %v2153_v39, %v4438_v36 }
 0xe05   :  { %2996 = vmatprep.subr.bf16.mxu0 %v2117_v45 }
 0xe08   :  { %2997 = vmatpush1.bf16.msra.mxu0 %v2116_v46 }
 0xe09   :  { %2998 = vmatprep.subr.bf16.mxu0 %v2151_v47 }
 0xe0c   :  { %2999 = vmatpush1.bf16.msra.mxu0 %v2150_v48 }
 0xe0f   :  { %3292 = vmatmul.mubr.msk.bf16.vlgmr.msra.gmra.mrb[40].mxu0 %vm2332_vm0, %v4480_v40 }
 0xe62   :  { %v2370_v55 = vpop.f32.mrb[8].mxu0  ;;  %v2411_v56 = vpop.f32.mrb[16].mxu1 }
 0xe63   :  { %v2371_v58 = vadd.f32 %v2370_v55, %v2165_v50  ;;  %v2412_v59 = vadd.f32 %v2411_v56, %v2173_v51  ;;  %v2372_v40 = vpop.f32.mrb[9].mxu0  ;;  %v2413_v17 = vpop.f32.mrb[17].mxu1 }
 0xe64   :  { %v2373_v60 = vadd.f32 %v2372_v40, %v2169_v53  ;;  %v2414_v62 = vadd.f32 %v2413_v17, %v2177_v21  ;;  %v2374_v1 = vpop.f32.mrb[10].mxu0  ;;  %v2415_v3 = vpop.f32.mrb[18].mxu1  ;;  %v2213_v17 = vrot.slane %v2153_v39, %v4443_v38 }
 0xe65   :  { %v2375_v4 = vpop.f32.mrb[11].mxu0  ;;  %v2416_v5 = vpop.f32.mrb[19].mxu1  ;;  %v2225_v1 = vrot.slane %v2153_v39, %v4547_v12 }
 0xe66   :  { %v3067_v6 = vcombine.low %v2371_v58, %v2373_v60  ;;  %v3068_v7 = vcombine.low %v2412_v59, %v2414_v62  ;;  %v2221_v60 = vrot.slane %v2153_v39, %v4544_v11  ;;  %v2217_v62 = vrot.slane %v2153_v39, %v4467_v2 }
 0xe68   :  { %v3075_v8 = vrot.slane %v3067_v6, %v4539_v61  ;;  %v3082_v9 = vrot.slane %v3068_v7, %v4539_v61 }
 0xe6a   :  { %v3083_v10 = vcombine.low %v3075_v8, %v3082_v9 }
 0xe6c   :  { %3220 = vst [vmem:[#allocation4] sm:$0xff] %v3083_v10 }
 0xe72   :  { %v2452_v52 = vpop.f32.mrb[12].mxu0  ;;  %v2493_v24 = vpop.f32.mrb[20].mxu1 }
 0xe73   :  { %v2453_v25 = vadd.f32 %v2452_v52, %v2181_v13  ;;  %v2494_v57 = vadd.f32 %v2493_v24, %v2189_v15  ;;  %v2454_v26 = vpop.f32.mrb[13].mxu0  ;;  %v2495_v27 = vpop.f32.mrb[21].mxu1 }
 0xe74   :  { %v2455_v28 = vadd.f32 %v2454_v26, %v2185_v63  ;;  %v2496_v29 = vadd.f32 %v2495_v27, %v2193_v23  ;;  %v2456_v30 = vpop.f32.mrb[14].mxu0  ;;  %v2497_v31 = vpop.f32.mrb[22].mxu1  ;;  %v2154_v27 = vld [vmem:[%s4625_s8 + $0x10] sm:$0xff] }
 0xe75   :  { %v2457_v18 = vpop.f32.mrb[15].mxu0  ;;  %v2498_v32 = vpop.f32.mrb[23].mxu1  ;;  %v2233_v30 = vrot.slane %v2154_v27, %v4322_v19  ;;  %v2241_v31 = vrot.slane %v2154_v27, %v4438_v36 }
 0xe76   :  { %v3084_v33 = vcombine.low %v2453_v25, %v2455_v28  ;;  %v3085_v0 = vcombine.low %v2494_v57, %v2496_v29  ;;  %v2229_v28 = vrot.slane %v2154_v27, %v4325_v20  ;;  %v2237_v29 = vrot.slane %v2154_v27, %v4378_v22 }
 0xe78   :  { %v3092_v34 = vrot.slane %v3084_v33, %v4539_v61  ;;  %v3099_v35 = vrot.slane %v3085_v0, %v4539_v61 }
 0xe7a   :  { %v3100_v37 = vcombine.low %v3092_v34, %v3099_v35 }
 0xe7c   :  { %3221 = vst [vmem:[#allocation4 + $0x8] sm:$0xff] %v3100_v37 }
 0xe82   :  { %v2534_v45 = vpop.f32.mrb[16].mxu0  ;;  %v2575_v46 = vpop.f32.mrb[24].mxu1 }
 0xe83   :  { %v2535_v47 = vadd.f32 %v2534_v45, %v2197_v41  ;;  %v2576_v48 = vadd.f32 %v2575_v46, %v2205_v42  ;;  %v2536_v16 = vpop.f32.mrb[17].mxu0  ;;  %v2577_v49 = vpop.f32.mrb[25].mxu1 }
 0xe84   :  { %v2537_v14 = vadd.f32 %v2536_v16, %v2201_v43  ;;  %v2578_v50 = vadd.f32 %v2577_v49, %v2209_v44  ;;  %v2538_v51 = vpop.f32.mrb[18].mxu0  ;;  %v2579_v53 = vpop.f32.mrb[26].mxu1  ;;  %v2245_v49 = vrot.slane %v2154_v27, %v4443_v38 }
 0xe85   :  { %v2539_v54 = vpop.f32.mrb[19].mxu0  ;;  %v2580_v21 = vpop.f32.mrb[27].mxu1  ;;  %v2257_v51 = vrot.slane %v2154_v27, %v4547_v12 }
 0xe86   :  { %v3101_v55 = vcombine.low %v2535_v47, %v2537_v14  ;;  %v3102_v56 = vcombine.low %v2576_v48, %v2578_v50  ;;  %v2253_v14 = vrot.slane %v2154_v27, %v4544_v11  ;;  %v2249_v50 = vrot.slane %v2154_v27, %v4467_v2 }
 0xe88   :  { %v3109_v58 = vrot.slane %v3101_v55, %v4539_v61  ;;  %v3116_v59 = vrot.slane %v3102_v56, %v4539_v61 }
 0xe8a   :  { %v3117_v40 = vcombine.low %v3109_v58, %v3116_v59 }
 0xe8c   :  { %3222 = vst [vmem:[#allocation4 + $0x10] sm:$0xff] %v3117_v40 }
 0xe92   :  { %v2616_v3 = vpop.f32.mrb[20].mxu0  ;;  %v2657_v4 = vpop.f32.mrb[28].mxu1 }
 0xe93   :  { %v2617_v5 = vadd.f32 %v2616_v3, %v2213_v17  ;;  %v2658_v6 = vadd.f32 %v2657_v4, %v2221_v60  ;;  %v2618_v7 = vpop.f32.mrb[21].mxu0  ;;  %v2659_v8 = vpop.f32.mrb[29].mxu1 }
 0xe94   :  { %v2619_v9 = vadd.f32 %v2618_v7, %v2217_v62  ;;  %v2660_v10 = vadd.f32 %v2659_v8, %v2225_v1  ;;  %v2620_v13 = vpop.f32.mrb[22].mxu0  ;;  %v2661_v15 = vpop.f32.mrb[30].mxu1  ;;  %v2155_v8 = vld [vmem:[%s4625_s8 + $0x18] sm:$0xff] }
 0xe95   :  { %v2621_v63 = vpop.f32.mrb[23].mxu0  ;;  %v2662_v23 = vpop.f32.mrb[31].mxu1  ;;  %v2265_v13 = vrot.slane %v2155_v8, %v4322_v19  ;;  %v2273_v15 = vrot.slane %v2155_v8, %v4438_v36  ;;  %v2277_v36 = vrot.slane %v2155_v8, %v4443_v38 }
 0xe96   :  { %v3118_v52 = vcombine.low %v2617_v5, %v2619_v9  ;;  %v3119_v24 = vcombine.low %v2658_v6, %v2660_v10  ;;  %v2261_v9 = vrot.slane %v2155_v8, %v4325_v20  ;;  %v2269_v10 = vrot.slane %v2155_v8, %v4378_v22 }
 0xe98   :  { %v3126_v25 = vrot.slane %v3118_v52, %v4539_v61  ;;  %v3133_v57 = vrot.slane %v3119_v24, %v4539_v61 }
 0xe9a   :  { %v3134_v26 = vcombine.low %v3126_v25, %v3133_v57 }
 0xe9c   :  { %3223 = vst [vmem:[#allocation4 + $0x18] sm:$0xff] %v3134_v26 }
 0xea2   :  { %v2698_v18 = vpop.f32.mrb[24].mxu0  ;;  %v2739_v32 = vpop.f32.mrb[32].mxu1 }
 0xea3   :  { %v2699_v33 = vadd.f32 %v2698_v18, %v2229_v28  ;;  %v2740_v0 = vadd.f32 %v2739_v32, %v2237_v29  ;;  %v2700_v34 = vpop.f32.mrb[25].mxu0  ;;  %v2741_v35 = vpop.f32.mrb[33].mxu1 }
 0xea4   :  { %v2701_v37 = vadd.f32 %v2700_v34, %v2233_v30  ;;  %v2742_v39 = vadd.f32 %v2741_v35, %v2241_v31  ;;  %v2702_v41 = vpop.f32.mrb[26].mxu0  ;;  %v2743_v42 = vpop.f32.mrb[34].mxu1  ;;  %v2285_v34 = vrot.slane %v2155_v8, %v4544_v11  ;;  %v2281_v35 = vrot.slane %v2155_v8, %v4467_v2 }
 0xea5   :  { %v2703_v43 = vpop.f32.mrb[27].mxu0  ;;  %v2744_v44 = vpop.f32.mrb[35].mxu1 }
 0xea6   :  { %v3135_v45 = vcombine.low %v2699_v33, %v2701_v37  ;;  %v3136_v46 = vcombine.low %v2740_v0, %v2742_v39  ;;  %v2289_v37 = vrot.slane %v2155_v8, %v4547_v12  ;;  %v2156_v12 = vld [vmem:[%s4625_s8 + $0x20] sm:$0x3] }
 0xea8   :  { %v3143_v47 = vrot.slane %v3135_v45, %v4539_v61  ;;  %v3150_v48 = vrot.slane %v3136_v46, %v4539_v61 }
 0xeaa   :  { %v3151_v16 = vcombine.low %v3143_v47, %v3150_v48 }
 0xeac   :  { %3224 = vst [vmem:[#allocation4 + $0x20] sm:$0xff] %v3151_v16 }
 0xeb2   :  { %v2780_v53 = vpop.f32.mrb[28].mxu0  ;;  %v2821_v54 = vpop.f32.mrb[36].mxu1 }
 0xeb3   :  { %v2781_v21 = vadd.f32 %v2780_v53, %v2245_v49  ;;  %v2822_v55 = vadd.f32 %v2821_v54, %v2253_v14  ;;  %v2782_v56 = vpop.f32.mrb[29].mxu0  ;;  %v2823_v58 = vpop.f32.mrb[37].mxu1  ;;  %v2293_v53 = vrot.slane %v2156_v12, %v4325_v20  ;;  %v2297_v54 = vrot.slane %v2156_v12, %v4322_v19 }
 0xeb4   :  { %v2783_v59 = vadd.f32 %v2782_v56, %v2249_v50  ;;  %v2824_v40 = vadd.f32 %v2823_v58, %v2257_v51  ;;  %v2784_v17 = vpop.f32.mrb[30].mxu0  ;;  %v2825_v60 = vpop.f32.mrb[38].mxu1 }
 0xeb5   :  { %v2785_v62 = vpop.f32.mrb[31].mxu0  ;;  %v2826_v1 = vpop.f32.mrb[39].mxu1 }
 0xeb6   :  { %v3152_v3 = vcombine.low %v2781_v21, %v2783_v59  ;;  %v3153_v4 = vcombine.low %v2822_v55, %v2824_v40 }
 0xeb8   :  { %v3160_v5 = vrot.slane %v3152_v3, %v4539_v61  ;;  %v3167_v6 = vrot.slane %v3153_v4, %v4539_v61 }
 0xeba   :  { %v3168_v7 = vcombine.low %v3160_v5, %v3167_v6 }
 0xebc   :  { %3225 = vst [vmem:[#allocation4 + $0x28] sm:$0xff] %v3168_v7 }
 0xec2   :  { %v2862_v63 = vpop.f32.mrb[32].mxu0  ;;  %v2903_v23 = vpop.f32.mrb[40].mxu1 }
 0xec3   :  { %v2863_v52 = vadd.f32 %v2862_v63, %v2261_v9  ;;  %v2904_v24 = vadd.f32 %v2903_v23, %v2269_v10  ;;  %v2864_v25 = vpop.f32.mrb[33].mxu0  ;;  %v2905_v57 = vpop.f32.mrb[41].mxu1 }
 0xec4   :  { %v2865_v26 = vadd.f32 %v2864_v25, %v2265_v13  ;;  %v2906_v27 = vadd.f32 %v2905_v57, %v2273_v15  ;;  %v2866_v28 = vpop.f32.mrb[34].mxu0  ;;  %v2907_v29 = vpop.f32.mrb[42].mxu1 }
 0xec5   :  { %v2867_v30 = vpop.f32.mrb[35].mxu0  ;;  %v2908_v31 = vpop.f32.mrb[43].mxu1 }
 0xec6   :  { %v3169_v18 = vcombine.low %v2863_v52, %v2865_v26  ;;  %v3170_v32 = vcombine.low %v2904_v24, %v2906_v27 }
 0xec8   :  { %v3177_v22 = vrot.slane %v3169_v18, %v4539_v61  ;;  %v3184_v33 = vrot.slane %v3170_v32, %v4539_v61 }
 0xeca   :  { %v3185_v0 = vcombine.low %v3177_v22, %v3184_v33 }
 0xecc   :  { %3226 = vst [vmem:[#allocation4 + $0x30] sm:$0xff] %v3185_v0 }
 0xed2   :  { %v2944_v39 = vpop.f32.mrb[36].mxu0  ;;  %v2985_v41 = vpop.f32.mrb[44].mxu1 }
 0xed3   :  { %v2945_v42 = vadd.f32 %v2944_v39, %v2277_v36  ;;  %v2986_v43 = vadd.f32 %v2985_v41, %v2285_v34  ;;  %v2946_v44 = vpop.f32.mrb[37].mxu0  ;;  %v2987_v45 = vpop.f32.mrb[45].mxu1 }
 0xed4   :  { %v2947_v46 = vadd.f32 %v2946_v44, %v2281_v35  ;;  %v2988_v47 = vadd.f32 %v2987_v45, %v2289_v37  ;;  %v2948_v48 = vpop.f32.mrb[38].mxu0  ;;  %v2989_v16 = vpop.f32.mrb[46].mxu1 }
 0xed5   :  { %v2949_v49 = vpop.f32.mrb[39].mxu0  ;;  %v2990_v14 = vpop.f32.mrb[47].mxu1 }
 0xed6   :  { %v3186_v50 = vcombine.low %v2945_v42, %v2947_v46  ;;  %v3187_v38 = vcombine.low %v2986_v43, %v2988_v47 }
 0xed8   :  { %v3194_v11 = vrot.slane %v3186_v50, %v4539_v61  ;;  %v3201_v2 = vrot.slane %v3187_v38, %v4539_v61 }
 0xeda   :  { %v3202_v51 = vcombine.low %v3194_v11, %v3201_v2 }
 0xedc   :  { %3227 = vst [vmem:[#allocation4 + $0x38] sm:$0xff] %v3202_v51 }
 0xee2   :  { %v3026_v21 = vpop.f32.mrb[40].mxu0 }
 0xee3   :  { %v3027_v55 = vadd.f32 %v3026_v21, %v2293_v53  ;;  %v3028_v56 = vpop.f32.mrb[41].mxu0 }
 0xee4   :  { %v3029_v58 = vadd.f32 %v3028_v56, %v2297_v54  ;;  %v3030_v59 = vpop.f32.mrb[42].mxu0 }
 0xee5   :  { %v3031_v40 = vpop.f32.mrb[43].mxu0 }
 0xee6   :  { %v3203_v17 = vcombine.low %v3027_v55, %v3029_v58 }
 0xee8   :  { %3293 = vst.sshfl [vmem:[#allocation4 + $0x40] sm:$0x33 pattern:$0x76325410] %v3203_v17 }
 0xee9   :  { %3430 = shalt.err (!%p3427_p4)
}
 0xeea   :  { %s3431_s1 = scalar_lea.hbm %s4626_s9, 1088 }
 0xeeb   :  { %p3432_p5 = scmp.ne.s32.totalorder %s4626_s9, %s3431_s1  ;;  %p3435_p6 = scmp.lt.u32.totalorder %s3431_s1, %s4626_s9 }
 0xeed   :  { %p3437_p7 = pnand %p3435_p6, %p3432_p5 }
 0xeef   :  { %3440 = shalt.err (!%p3437_p7)
}
 0xef0   :  { %3238 = dma.vmem_to_hbm [thread:$0]  %s3236_s5, 1088, %s4626_s9, [#allocation5]  }
 0xef1   :  { %3443 = dma.done.wait [#allocation5], 1088  }
 0xef2   :  { %3444 = vsyncadd [#allocation5], 4294966208 }
 0xef3   :  { %3242 = vsyncpa [#allocation5], 1 }
 0xef4   :  { %3243 = vsyncmov [#allocation3] }
 0xef7   :  { %s3244_s3 = vpop.sfrf %3243 }
 0xef8   :  { %p3294_p8 = scmp.ne.s32.totalorder %s3244_s3, 0 }
 0xefa   :  { %3248 = shalt.err (%p3294_p8)  }

</bundles_post_ra>
